<compile_context>
chip_gen: v7x
topology: tpu7x:2x2x1
jax: 0.10.0
libtpu: 0.0.40
codegen_flags: <defaults>
</compile_context>

<pallas_src>
import math
import functools

import jax
import jax.numpy as jnp
import numpy as np
from jax.experimental import pallas as pl
from jax.experimental.pallas import tpu as pltpu

EPS = 1e-5  # nn.LayerNorm default eps


def _layer_norm(z, w, b):
    mu = jnp.mean(z, axis=-1, keepdims=True)
    var = jnp.mean(jnp.square(z - mu), axis=-1, keepdims=True)
    return (z - mu) * jax.lax.rsqrt(var + EPS) * w + b


def attention_block_kernel(x_ref, ln1w_ref, ln1b_ref,
                           wqkv_ref, bqkv_ref, wo_ref, bo_ref,
                           ln2w_ref, ln2b_ref,
                           w1_ref, b1_ref, w2_ref, b2_ref,
                           o_ref, *, num_heads):
    nb, L, E = x_ref.shape
    hd = E // num_heads
    m = nb * L

    # (NB, L, E) -> (NB*L, E): fold batch into the matmul M dimension.
    x2d = x_ref[...].astype(jnp.float32).reshape(m, E)

    # ---- LayerNorm 1 (f32) ----
    xn = _layer_norm(x2d, ln1w_ref[...], ln1b_ref[...])
    xn_bf = xn.astype(jnp.bfloat16)

    # ---- Multi-head self attention ----
    # Per-head fused QKV weight (E, 3*hd); q already scaled by 1/sqrt(hd) wrapper-side.
    attn = jnp.zeros((m, E), jnp.float32)
    for h in range(num_heads):  # static unroll (num_heads is small)
        qkv = jnp.dot(xn_bf, wqkv_ref[h],
                      preferred_element_type=jnp.float32) + bqkv_ref[h]   # (m, 3*hd)
        q3 = qkv[:, 0 * hd:1 * hd].reshape(nb, L, hd).astype(jnp.bfloat16)
        k3 = qkv[:, 1 * hd:2 * hd].reshape(nb, L, hd).astype(jnp.bfloat16)
        v3 = qkv[:, 2 * hd:3 * hd].reshape(nb, L, hd).astype(jnp.bfloat16)

        s = jnp.einsum('bld,bmd->blm', q3, k3,
                       preferred_element_type=jnp.float32)                # (nb, L, L)
        s = s - jnp.max(s, axis=-1, keepdims=True)
        p = jnp.exp(s)
        p = p * pl.reciprocal(jnp.sum(p, axis=-1, keepdims=True), approx=True)

        a3 = jnp.einsum('blm,bmd->bld', p.astype(jnp.bfloat16), v3,
                        preferred_element_type=jnp.float32)               # (nb, L, hd)
        attn = attn + jnp.dot(a3.reshape(m, hd).astype(jnp.bfloat16), wo_ref[h],
                              preferred_element_type=jnp.float32)         # (m, E)

    # ---- Residual 1 (+ out-projection bias) ----
    x2d = x2d + attn + bo_ref[...]

    # ---- LayerNorm 2 + MLP (Linear -> exact GELU -> Linear) ----
    xn2 = _layer_norm(x2d, ln2w_ref[...], ln2b_ref[...])
    h1 = jnp.dot(xn2.astype(jnp.bfloat16), w1_ref[...],
                 preferred_element_type=jnp.float32) + b1_ref[...]        # (m, H)
    g = 0.5 * h1 * (1.0 + jax.lax.erf(h1 * (1.0 / math.sqrt(2.0))))       # exact erf GELU, f32
    h2 = jnp.dot(g.astype(jnp.bfloat16), w2_ref[...],
                 preferred_element_type=jnp.float32) + b2_ref[...]        # (m, E)

    # ---- Residual 2 ----
    o_ref[...] = (x2d + h2).reshape(nb, L, E).astype(o_ref.dtype)


def _pick_batch_block(n, seq_len, target_rows=256):
    """Largest divisor of n such that the per-step slab has ~target_rows rows."""
    nb = max(1, min(n, max(1, target_rows // max(seq_len, 1))))
    while n % nb:
        nb -= 1
    return nb


def attention_block(x, params, num_heads, *, batch_block=None):
    """x: (L, N, E) sequence-first, matching PyTorch nn.MultiheadAttention default."""
    L, N, E = x.shape
    H = params["w1"].shape[0]
    hd = E // num_heads
    nb = batch_block or _pick_batch_block(N, L)
    scale = 1.0 / math.sqrt(hd)

    # Batch-major activations for the kernel.  (For an (N, L, E)-native pipeline these
    # two XLA transposes disappear entirely.)
    x_t = jnp.transpose(x, (1, 0, 2))  # (N, L, E)

    bf16 = jnp.bfloat16
    wqkv, bqkv = params["wqkv"], params["bqkv"]

    def per_head_weight(w):  # (E_out, E_in) -> (nh, E_in, hd), pre-transposed for x @ w
        return jnp.transpose(w.reshape(num_heads, hd, E), (0, 2, 1))

    # Fused per-head QKV weight/bias, attention scale folded into the q part.
    wq_h = per_head_weight(wqkv[0 * E:1 * E]) * scale
    wk_h = per_head_weight(wqkv[1 * E:2 * E])
    wv_h = per_head_weight(wqkv[2 * E:3 * E])
    wqkv_h = jnp.concatenate([wq_h, wk_h, wv_h], axis=-1).astype(bf16)   # (nh, E, 3*hd)
    bq_h = (bqkv[0 * E:1 * E] * scale).reshape(num_heads, 1, hd)
    bk_h = bqkv[1 * E:2 * E].reshape(num_heads, 1, hd)
    bv_h = bqkv[2 * E:3 * E].reshape(num_heads, 1, hd)
    bqkv_h = jnp.concatenate([bq_h, bk_h, bv_h], axis=-1)                # (nh, 1, 3*hd) f32

    wo_h = jnp.transpose(params["wo"]).reshape(num_heads, hd, E).astype(bf16)
    w1_t = jnp.transpose(params["w1"]).astype(bf16)  # (E, H)
    w2_t = jnp.transpose(params["w2"]).astype(bf16)  # (H, E)

    weights = (
        params["ln1_w"].reshape(1, E), params["ln1_b"].reshape(1, E),
        wqkv_h, bqkv_h,
        wo_h, params["bo"].reshape(1, E),
        params["ln2_w"].reshape(1, E), params["ln2_b"].reshape(1, E),
        w1_t, params["b1"].reshape(1, H),
        w2_t, params["b2"].reshape(1, E),
    )

    def const_spec(shape):  # whole-array block, same tile every grid step
        zeros = (0,) * len(shape)
        return pl.BlockSpec(shape, lambda b, z=zeros: z)

    in_specs = [pl.BlockSpec((nb, L, E), lambda b: (b, 0, 0))]
    in_specs += [const_spec(w.shape) for w in weights]
    out_spec = pl.BlockSpec((nb, L, E), lambda b: (b, 0, 0))

    # Advisory cost estimate so XLA schedules the custom call sensibly.
    m_total = N * L
    flops = (2 * m_total * E * 3 * E            # qkv projections
             + 4 * N * num_heads * L * L * hd   # scores + attn @ V
             + 2 * m_total * E * E              # out projection
             + 4 * m_total * E * H)             # MLP
    transcendentals = N * num_heads * L * L + m_total * H + 2 * m_total
    weight_bytes = sum(int(w.size) * w.dtype.itemsize for w in weights)
    bytes_accessed = 2 * m_total * E * x.dtype.itemsize + weight_bytes
    cost = pl.CostEstimate(flops=int(flops), transcendentals=int(transcendentals),
                           bytes_accessed=int(bytes_accessed))

    # Explicit VMEM budget: double-buffered activation blocks + weights + working set.
    blk_io = 2 * nb * L * E * 4
    acts = 4 * nb * L * (4 * E + H + 3 * hd) + 4 * nb * num_heads * L * L
    vmem_limit = int(min(100 * 2**20,
                         max(32 * 2**20, 2 * 2 * blk_io + 2 * weight_bytes + 4 * acts)))

    kernel = functools.partial(attention_block_kernel, num_heads=num_heads)
    out = pl.pallas_call(
        kernel,
        out_shape=jax.ShapeDtypeStruct((N, L, E), x.dtype),
        grid=(N // nb,),
        in_specs=in_specs,
        out_specs=out_spec,
        compiler_params=pltpu.CompilerParams(
            dimension_semantics=("parallel",),
            vmem_limit_bytes=vmem_limit),
        cost_estimate=cost,
    )(x_t, *weights)
    return jnp.transpose(out, (1, 0, 2))  # back to (L, N, E)


def reference(x, params, num_heads):
    """Pure-JAX f32 reference mirroring the PyTorch AttentionBlock forward."""
    L, N, E = x.shape
    hd = E // num_heads

    def ln(z, w, b):
        mu = z.mean(-1, keepdims=True)
        var = ((z - mu) ** 2).mean(-1, keepdims=True)
        return (z - mu) / jnp.sqrt(var + EPS) * w + b

    xn = ln(x, params["ln1_w"], params["ln1_b"])
    qkv = xn @ params["wqkv"].T + params["bqkv"]
    q, k, v = jnp.split(qkv, 3, axis=-1)

    def to_heads(t):
        return jnp.transpose(t.reshape(L, N, num_heads, hd), (1, 2, 0, 3))

    qh, kh, vh = to_heads(q), to_heads(k), to_heads(v)
    s = (qh / math.sqrt(hd)) @ jnp.swapaxes(kh, -1, -2)
    p = jax.nn.softmax(s, axis=-1)
    a = p @ vh                                    # (N, nh, L, hd)
    a = jnp.transpose(a, (2, 0, 1, 3)).reshape(L, N, E)
    a = a @ params["wo"].T + params["bo"]
    x = x + a
    xn2 = ln(x, params["ln2_w"], params["ln2_b"])
    h1 = xn2 @ params["w1"].T + params["b1"]
    g = 0.5 * h1 * (1.0 + jax.lax.erf(h1 * (1.0 / math.sqrt(2.0))))
    h2 = g @ params["w2"].T + params["b2"]
    return x + h2


def init_params(key, embed_dim, hidden_dim):
    ks = jax.random.split(key, 6)
    s = 0.05
    return {
        "ln1_w": jnp.ones((embed_dim,), jnp.float32),
        "ln1_b": jnp.zeros((embed_dim,), jnp.float32),
        "wqkv": s * jax.random.normal(ks[0], (3 * embed_dim, embed_dim), jnp.float32),
        "bqkv": s * jax.random.normal(ks[1], (3 * embed_dim,), jnp.float32),
        "wo": s * jax.random.normal(ks[2], (embed_dim, embed_dim), jnp.float32),
        "bo": jnp.zeros((embed_dim,), jnp.float32),
        "ln2_w": jnp.ones((embed_dim,), jnp.float32),
        "ln2_b": jnp.zeros((embed_dim,), jnp.float32),
        "w1": s * jax.random.normal(ks[3], (hidden_dim, embed_dim), jnp.float32),
        "b1": s * jax.random.normal(ks[4], (hidden_dim,), jnp.float32),
        "w2": s * jax.random.normal(ks[5], (embed_dim, hidden_dim), jnp.float32),
        "b2": jnp.zeros((embed_dim,), jnp.float32),
    }


if __name__ == "__main__":
    L, N, E, H, NH = 8, 2, 32, 64, 4  # seq, batch, embed_dim, hidden_dim, num_heads

    key = jax.random.PRNGKey(0)
    k_x, k_p = jax.random.split(key)
    x = jax.random.normal(k_x, (L, N, E), jnp.float32)   # (seq, batch, embed) like PyTorch
    params = init_params(k_p, E, H)

    out = attention_block(x, params, NH)
    out = jax.block_until_ready(out)

    ref = reference(x, params, NH)
    # bf16 MXU operands with f32 accumulation -> compare at loosened tolerance.
    np.testing.assert_allclose(np.asarray(out), np.asarray(ref), rtol=2e-2, atol=2e-2)

    print("KERNEL_OK")
</pallas_src>

<mosaic_0001>
module attributes {stable_mosaic.version = 11 : i64} {
  func.func @attention_block_kernel(%arg0: i32, %arg1: memref<2x8x32xf32, #tpu.memory_space<vmem>>, %arg2: memref<1x32xf32, #tpu.memory_space<vmem>>, %arg3: memref<1x32xf32, #tpu.memory_space<vmem>>, %arg4: memref<4x32x24xbf16, #tpu.memory_space<vmem>>, %arg5: memref<4x1x24xf32, #tpu.memory_space<vmem>>, %arg6: memref<4x8x32xbf16, #tpu.memory_space<vmem>>, %arg7: memref<1x32xf32, #tpu.memory_space<vmem>>, %arg8: memref<1x32xf32, #tpu.memory_space<vmem>>, %arg9: memref<1x32xf32, #tpu.memory_space<vmem>>, %arg10: memref<32x64xbf16, #tpu.memory_space<vmem>>, %arg11: memref<1x64xf32, #tpu.memory_space<vmem>>, %arg12: memref<64x32xbf16, #tpu.memory_space<vmem>>, %arg13: memref<1x32xf32, #tpu.memory_space<vmem>>, %arg14: memref<2x8x32xf32, #tpu.memory_space<vmem>>) attributes {dimension_semantics = [#tpu.dimension_semantics<parallel>], iteration_bounds = array<i64: 1>, scalar_prefetch = 0 : i64, scratch_operands = 0 : i64, tpu.core_type = #tpu.core_type<tc>, window_params = [{transform_indices = @transform_0, window_bounds = array<i64: 2, 8, 32>}, {pipeline_mode = #tpu.pipeline_mode<synchronous>, transform_indices = @transform_1, window_bounds = array<i64: 1, 32>}, {pipeline_mode = #tpu.pipeline_mode<synchronous>, transform_indices = @transform_2, window_bounds = array<i64: 1, 32>}, {pipeline_mode = #tpu.pipeline_mode<synchronous>, transform_indices = @transform_3, window_bounds = array<i64: 4, 32, 24>}, {pipeline_mode = #tpu.pipeline_mode<synchronous>, transform_indices = @transform_4, window_bounds = array<i64: 4, 1, 24>}, {pipeline_mode = #tpu.pipeline_mode<synchronous>, transform_indices = @transform_5, window_bounds = array<i64: 4, 8, 32>}, {pipeline_mode = #tpu.pipeline_mode<synchronous>, transform_indices = @transform_6, window_bounds = array<i64: 1, 32>}, {pipeline_mode = #tpu.pipeline_mode<synchronous>, transform_indices = @transform_7, window_bounds = array<i64: 1, 32>}, {pipeline_mode = #tpu.pipeline_mode<synchronous>, transform_indices = @transform_8, window_bounds = array<i64: 1, 32>}, {pipeline_mode = #tpu.pipeline_mode<synchronous>, transform_indices = @transform_9, window_bounds = array<i64: 32, 64>}, {pipeline_mode = #tpu.pipeline_mode<synchronous>, transform_indices = @transform_10, window_bounds = array<i64: 1, 64>}, {pipeline_mode = #tpu.pipeline_mode<synchronous>, transform_indices = @transform_11, window_bounds = array<i64: 64, 32>}, {pipeline_mode = #tpu.pipeline_mode<synchronous>, transform_indices = @transform_12, window_bounds = array<i64: 1, 32>}, {transform_indices = @transform_13, window_bounds = array<i64: 2, 8, 32>}]} {
    %c0 = arith.constant 0 : index
    %c0_0 = arith.constant 0 : index
    %c0_1 = arith.constant 0 : index
    %0 = vector.load %arg1[%c0, %c0_0, %c0_1] : memref<2x8x32xf32, #tpu.memory_space<vmem>>, vector<2x8x32xf32>
    %1 = vector.shape_cast %0 : vector<2x8x32xf32> to vector<16x32xf32>
    %c0_2 = arith.constant 0 : index
    %c0_3 = arith.constant 0 : index
    %2 = vector.load %arg2[%c0_2, %c0_3] : memref<1x32xf32, #tpu.memory_space<vmem>>, vector<1x32xf32>
    %c0_4 = arith.constant 0 : index
    %c0_5 = arith.constant 0 : index
    %3 = vector.load %arg3[%c0_4, %c0_5] : memref<1x32xf32, #tpu.memory_space<vmem>>, vector<1x32xf32>
    %cst = arith.constant dense<0.000000e+00> : vector<16xf32>
    %4 = vector.multi_reduction <add>, %1, %cst [1] : vector<16x32xf32> to vector<16xf32>
    %5 = vector.shape_cast %4 : vector<16xf32> to vector<16x1xf32>
    %cst_6 = arith.constant 3.200000e+01 : f32
    %6 = vector.broadcast %cst_6 : f32 to vector<16x1xf32>
    %7 = arith.divf %5, %6 : vector<16x1xf32>
    %8 = vector.broadcast %7 : vector<16x1xf32> to vector<16x32xf32>
    %9 = arith.subf %1, %8 : vector<16x32xf32>
    %10 = arith.mulf %9, %9 : vector<16x32xf32>
    %cst_7 = arith.constant dense<0.000000e+00> : vector<16xf32>
    %11 = vector.multi_reduction <add>, %10, %cst_7 [1] : vector<16x32xf32> to vector<16xf32>
    %12 = vector.shape_cast %11 : vector<16xf32> to vector<16x1xf32>
    %cst_8 = arith.constant 3.200000e+01 : f32
    %13 = vector.broadcast %cst_8 : f32 to vector<16x1xf32>
    %14 = arith.divf %12, %13 : vector<16x1xf32>
    %15 = vector.broadcast %7 : vector<16x1xf32> to vector<16x32xf32>
    %16 = arith.subf %1, %15 : vector<16x32xf32>
    %cst_9 = arith.constant 9.99999974E-6 : f32
    %17 = vector.broadcast %cst_9 : f32 to vector<16x1xf32>
    %18 = arith.addf %14, %17 : vector<16x1xf32>
    %19 = math.rsqrt %18 : vector<16x1xf32>
    %20 = vector.broadcast %19 : vector<16x1xf32> to vector<16x32xf32>
    %21 = arith.mulf %16, %20 : vector<16x32xf32>
    %22 = vector.broadcast %2 : vector<1x32xf32> to vector<16x32xf32>
    %23 = arith.mulf %21, %22 : vector<16x32xf32>
    %24 = vector.broadcast %3 : vector<1x32xf32> to vector<16x32xf32>
    %25 = arith.addf %23, %24 : vector<16x32xf32>
    %26 = arith.truncf %25 : vector<16x32xf32> to vector<16x32xbf16>
    %cst_10 = arith.constant 0.000000e+00 : f32
    %27 = vector.broadcast %cst_10 : f32 to vector<16x32xf32>
    %c0_11 = arith.constant 0 : index
    %c0_12 = arith.constant 0 : index
    %c0_13 = arith.constant 0 : index
    %28 = vector.load %arg4[%c0_11, %c0_12, %c0_13] : memref<4x32x24xbf16, #tpu.memory_space<vmem>>, vector<1x32x24xbf16>
    %29 = vector.shape_cast %28 : vector<1x32x24xbf16> to vector<32x24xbf16>
    %cst_14 = arith.constant dense<0.000000e+00> : vector<16x24xf32>
    %30 = tpu.matmul %26, %29, %cst_14 {dimension_numbers = #tpu.dot_dimension_numbers<[1], [0], [0], [1], [0, 0, 1, 1], [], []>} : vector<16x32xbf16>, vector<32x24xbf16>, vector<16x24xf32> -> vector<16x24xf32>
    %c0_15 = arith.constant 0 : index
    %c0_16 = arith.constant 0 : index
    %c0_17 = arith.constant 0 : index
    %31 = vector.load %arg5[%c0_15, %c0_16, %c0_17] : memref<4x1x24xf32, #tpu.memory_space<vmem>>, vector<1x1x24xf32>
    %32 = vector.shape_cast %31 : vector<1x1x24xf32> to vector<1x24xf32>
    %33 = vector.broadcast %32 : vector<1x24xf32> to vector<16x24xf32>
    %34 = arith.addf %30, %33 : vector<16x24xf32>
    %35 = vector.extract_strided_slice %34 {offsets = [0, 0], sizes = [16, 8], strides = [1, 1]} : vector<16x24xf32> to vector<16x8xf32>
    %36 = vector.shape_cast %35 : vector<16x8xf32> to vector<2x8x8xf32>
    %37 = arith.truncf %36 : vector<2x8x8xf32> to vector<2x8x8xbf16>
    %38 = vector.extract_strided_slice %34 {offsets = [0, 8], sizes = [16, 8], strides = [1, 1]} : vector<16x24xf32> to vector<16x8xf32>
    %39 = vector.shape_cast %38 : vector<16x8xf32> to vector<2x8x8xf32>
    %40 = arith.truncf %39 : vector<2x8x8xf32> to vector<2x8x8xbf16>
    %41 = vector.extract_strided_slice %34 {offsets = [0, 16], sizes = [16, 8], strides = [1, 1]} : vector<16x24xf32> to vector<16x8xf32>
    %42 = vector.shape_cast %41 : vector<16x8xf32> to vector<2x8x8xf32>
    %43 = arith.truncf %42 : vector<2x8x8xf32> to vector<2x8x8xbf16>
    "tpu.trace_start"() <{level = 10 : i32, message = "bld,bmd->blm"}> : () -> ()
    %cst_18 = arith.constant dense<0.000000e+00> : vector<2x8x8xf32>
    %44 = tpu.matmul %37, %40, %cst_18 {dimension_numbers = #tpu.dot_dimension_numbers<[2], [2], [1], [1], [0, 0, 0, 1, 1, 1], [0], [0]>} : vector<2x8x8xbf16>, vector<2x8x8xbf16>, vector<2x8x8xf32> -> vector<2x8x8xf32>
    "tpu.trace_stop"() : () -> ()
    %cst_19 = arith.constant dense<0xFF800000> : vector<2x8xf32>
    %45 = vector.multi_reduction <maximumf>, %44, %cst_19 [2] : vector<2x8x8xf32> to vector<2x8xf32>
    %46 = vector.shape_cast %45 : vector<2x8xf32> to vector<2x8x1xf32>
    %47 = vector.broadcast %46 : vector<2x8x1xf32> to vector<2x8x8xf32>
    %48 = arith.subf %44, %47 : vector<2x8x8xf32>
    %49 = math.exp %48 : vector<2x8x8xf32>
    %cst_20 = arith.constant dense<0.000000e+00> : vector<2x8xf32>
    %50 = vector.multi_reduction <add>, %49, %cst_20 [2] : vector<2x8x8xf32> to vector<2x8xf32>
    %51 = vector.shape_cast %50 : vector<2x8xf32> to vector<2x8x1xf32>
    %52 = tpu.reciprocal %51 {approx = true} : vector<2x8x1xf32> -> vector<2x8x1xf32>
    %53 = vector.broadcast %52 : vector<2x8x1xf32> to vector<2x8x8xf32>
    %54 = arith.mulf %49, %53 : vector<2x8x8xf32>
    %55 = arith.truncf %54 : vector<2x8x8xf32> to vector<2x8x8xbf16>
    "tpu.trace_start"() <{level = 10 : i32, message = "blm,bmd->bld"}> : () -> ()
    %cst_21 = arith.constant dense<0.000000e+00> : vector<2x8x8xf32>
    %56 = tpu.matmul %55, %43, %cst_21 {dimension_numbers = #tpu.dot_dimension_numbers<[2], [1], [1], [2], [0, 0, 0, 1, 1, 2], [0], [0]>} : vector<2x8x8xbf16>, vector<2x8x8xbf16>, vector<2x8x8xf32> -> vector<2x8x8xf32>
    "tpu.trace_stop"() : () -> ()
    %57 = vector.shape_cast %56 : vector<2x8x8xf32> to vector<16x8xf32>
    %58 = arith.truncf %57 : vector<16x8xf32> to vector<16x8xbf16>
    %c0_22 = arith.constant 0 : index
    %c0_23 = arith.constant 0 : index
    %c0_24 = arith.constant 0 : index
    %59 = vector.load %arg6[%c0_22, %c0_23, %c0_24] : memref<4x8x32xbf16, #tpu.memory_space<vmem>>, vector<1x8x32xbf16>
    %60 = vector.shape_cast %59 : vector<1x8x32xbf16> to vector<8x32xbf16>
    %cst_25 = arith.constant dense<0.000000e+00> : vector<16x32xf32>
    %61 = tpu.matmul %58, %60, %cst_25 {dimension_numbers = #tpu.dot_dimension_numbers<[1], [0], [0], [1], [0, 0, 1, 1], [], []>} : vector<16x8xbf16>, vector<8x32xbf16>, vector<16x32xf32> -> vector<16x32xf32>
    %62 = arith.addf %27, %61 : vector<16x32xf32>
    %c1 = arith.constant 1 : index
    %c0_26 = arith.constant 0 : index
    %c0_27 = arith.constant 0 : index
    %63 = vector.load %arg4[%c1, %c0_26, %c0_27] : memref<4x32x24xbf16, #tpu.memory_space<vmem>>, vector<1x32x24xbf16>
    %64 = vector.shape_cast %63 : vector<1x32x24xbf16> to vector<32x24xbf16>
    %cst_28 = arith.constant dense<0.000000e+00> : vector<16x24xf32>
    %65 = tpu.matmul %26, %64, %cst_28 {dimension_numbers = #tpu.dot_dimension_numbers<[1], [0], [0], [1], [0, 0, 1, 1], [], []>} : vector<16x32xbf16>, vector<32x24xbf16>, vector<16x24xf32> -> vector<16x24xf32>
    %c1_29 = arith.constant 1 : index
    %c0_30 = arith.constant 0 : index
    %c0_31 = arith.constant 0 : index
    %66 = vector.load %arg5[%c1_29, %c0_30, %c0_31] : memref<4x1x24xf32, #tpu.memory_space<vmem>>, vector<1x1x24xf32>
    %67 = vector.shape_cast %66 : vector<1x1x24xf32> to vector<1x24xf32>
    %68 = vector.broadcast %67 : vector<1x24xf32> to vector<16x24xf32>
    %69 = arith.addf %65, %68 : vector<16x24xf32>
    %70 = vector.extract_strided_slice %69 {offsets = [0, 0], sizes = [16, 8], strides = [1, 1]} : vector<16x24xf32> to vector<16x8xf32>
    %71 = vector.shape_cast %70 : vector<16x8xf32> to vector<2x8x8xf32>
    %72 = arith.truncf %71 : vector<2x8x8xf32> to vector<2x8x8xbf16>
    %73 = vector.extract_strided_slice %69 {offsets = [0, 8], sizes = [16, 8], strides = [1, 1]} : vector<16x24xf32> to vector<16x8xf32>
    %74 = vector.shape_cast %73 : vector<16x8xf32> to vector<2x8x8xf32>
    %75 = arith.truncf %74 : vector<2x8x8xf32> to vector<2x8x8xbf16>
    %76 = vector.extract_strided_slice %69 {offsets = [0, 16], sizes = [16, 8], strides = [1, 1]} : vector<16x24xf32> to vector<16x8xf32>
    %77 = vector.shape_cast %76 : vector<16x8xf32> to vector<2x8x8xf32>
    %78 = arith.truncf %77 : vector<2x8x8xf32> to vector<2x8x8xbf16>
    "tpu.trace_start"() <{level = 10 : i32, message = "bld,bmd->blm"}> : () -> ()
    %cst_32 = arith.constant dense<0.000000e+00> : vector<2x8x8xf32>
    %79 = tpu.matmul %72, %75, %cst_32 {dimension_numbers = #tpu.dot_dimension_numbers<[2], [2], [1], [1], [0, 0, 0, 1, 1, 1], [0], [0]>} : vector<2x8x8xbf16>, vector<2x8x8xbf16>, vector<2x8x8xf32> -> vector<2x8x8xf32>
    "tpu.trace_stop"() : () -> ()
    %cst_33 = arith.constant dense<0xFF800000> : vector<2x8xf32>
    %80 = vector.multi_reduction <maximumf>, %79, %cst_33 [2] : vector<2x8x8xf32> to vector<2x8xf32>
    %81 = vector.shape_cast %80 : vector<2x8xf32> to vector<2x8x1xf32>
    %82 = vector.broadcast %81 : vector<2x8x1xf32> to vector<2x8x8xf32>
    %83 = arith.subf %79, %82 : vector<2x8x8xf32>
    %84 = math.exp %83 : vector<2x8x8xf32>
    %cst_34 = arith.constant dense<0.000000e+00> : vector<2x8xf32>
    %85 = vector.multi_reduction <add>, %84, %cst_34 [2] : vector<2x8x8xf32> to vector<2x8xf32>
    %86 = vector.shape_cast %85 : vector<2x8xf32> to vector<2x8x1xf32>
    %87 = tpu.reciprocal %86 {approx = true} : vector<2x8x1xf32> -> vector<2x8x1xf32>
    %88 = vector.broadcast %87 : vector<2x8x1xf32> to vector<2x8x8xf32>
    %89 = arith.mulf %84, %88 : vector<2x8x8xf32>
    %90 = arith.truncf %89 : vector<2x8x8xf32> to vector<2x8x8xbf16>
    "tpu.trace_start"() <{level = 10 : i32, message = "blm,bmd->bld"}> : () -> ()
    %cst_35 = arith.constant dense<0.000000e+00> : vector<2x8x8xf32>
    %91 = tpu.matmul %90, %78, %cst_35 {dimension_numbers = #tpu.dot_dimension_numbers<[2], [1], [1], [2], [0, 0, 0, 1, 1, 2], [0], [0]>} : vector<2x8x8xbf16>, vector<2x8x8xbf16>, vector<2x8x8xf32> -> vector<2x8x8xf32>
    "tpu.trace_stop"() : () -> ()
    %92 = vector.shape_cast %91 : vector<2x8x8xf32> to vector<16x8xf32>
    %93 = arith.truncf %92 : vector<16x8xf32> to vector<16x8xbf16>
    %c1_36 = arith.constant 1 : index
    %c0_37 = arith.constant 0 : index
    %c0_38 = arith.constant 0 : index
    %94 = vector.load %arg6[%c1_36, %c0_37, %c0_38] : memref<4x8x32xbf16, #tpu.memory_space<vmem>>, vector<1x8x32xbf16>
    %95 = vector.shape_cast %94 : vector<1x8x32xbf16> to vector<8x32xbf16>
    %cst_39 = arith.constant dense<0.000000e+00> : vector<16x32xf32>
    %96 = tpu.matmul %93, %95, %cst_39 {dimension_numbers = #tpu.dot_dimension_numbers<[1], [0], [0], [1], [0, 0, 1, 1], [], []>} : vector<16x8xbf16>, vector<8x32xbf16>, vector<16x32xf32> -> vector<16x32xf32>
    %97 = arith.addf %62, %96 : vector<16x32xf32>
    %c2 = arith.constant 2 : index
    %c0_40 = arith.constant 0 : index
    %c0_41 = arith.constant 0 : index
    %98 = vector.load %arg4[%c2, %c0_40, %c0_41] : memref<4x32x24xbf16, #tpu.memory_space<vmem>>, vector<1x32x24xbf16>
    %99 = vector.shape_cast %98 : vector<1x32x24xbf16> to vector<32x24xbf16>
    %cst_42 = arith.constant dense<0.000000e+00> : vector<16x24xf32>
    %100 = tpu.matmul %26, %99, %cst_42 {dimension_numbers = #tpu.dot_dimension_numbers<[1], [0], [0], [1], [0, 0, 1, 1], [], []>} : vector<16x32xbf16>, vector<32x24xbf16>, vector<16x24xf32> -> vector<16x24xf32>
    %c2_43 = arith.constant 2 : index
    %c0_44 = arith.constant 0 : index
    %c0_45 = arith.constant 0 : index
    %101 = vector.load %arg5[%c2_43, %c0_44, %c0_45] : memref<4x1x24xf32, #tpu.memory_space<vmem>>, vector<1x1x24xf32>
    %102 = vector.shape_cast %101 : vector<1x1x24xf32> to vector<1x24xf32>
    %103 = vector.broadcast %102 : vector<1x24xf32> to vector<16x24xf32>
    %104 = arith.addf %100, %103 : vector<16x24xf32>
    %105 = vector.extract_strided_slice %104 {offsets = [0, 0], sizes = [16, 8], strides = [1, 1]} : vector<16x24xf32> to vector<16x8xf32>
    %106 = vector.shape_cast %105 : vector<16x8xf32> to vector<2x8x8xf32>
    %107 = arith.truncf %106 : vector<2x8x8xf32> to vector<2x8x8xbf16>
    %108 = vector.extract_strided_slice %104 {offsets = [0, 8], sizes = [16, 8], strides = [1, 1]} : vector<16x24xf32> to vector<16x8xf32>
    %109 = vector.shape_cast %108 : vector<16x8xf32> to vector<2x8x8xf32>
    %110 = arith.truncf %109 : vector<2x8x8xf32> to vector<2x8x8xbf16>
    %111 = vector.extract_strided_slice %104 {offsets = [0, 16], sizes = [16, 8], strides = [1, 1]} : vector<16x24xf32> to vector<16x8xf32>
    %112 = vector.shape_cast %111 : vector<16x8xf32> to vector<2x8x8xf32>
    %113 = arith.truncf %112 : vector<2x8x8xf32> to vector<2x8x8xbf16>
    "tpu.trace_start"() <{level = 10 : i32, message = "bld,bmd->blm"}> : () -> ()
    %cst_46 = arith.constant dense<0.000000e+00> : vector<2x8x8xf32>
    %114 = tpu.matmul %107, %110, %cst_46 {dimension_numbers = #tpu.dot_dimension_numbers<[2], [2], [1], [1], [0, 0, 0, 1, 1, 1], [0], [0]>} : vector<2x8x8xbf16>, vector<2x8x8xbf16>, vector<2x8x8xf32> -> vector<2x8x8xf32>
    "tpu.trace_stop"() : () -> ()
    %cst_47 = arith.constant dense<0xFF800000> : vector<2x8xf32>
    %115 = vector.multi_reduction <maximumf>, %114, %cst_47 [2] : vector<2x8x8xf32> to vector<2x8xf32>
    %116 = vector.shape_cast %115 : vector<2x8xf32> to vector<2x8x1xf32>
    %117 = vector.broadcast %116 : vector<2x8x1xf32> to vector<2x8x8xf32>
    %118 = arith.subf %114, %117 : vector<2x8x8xf32>
    %119 = math.exp %118 : vector<2x8x8xf32>
    %cst_48 = arith.constant dense<0.000000e+00> : vector<2x8xf32>
    %120 = vector.multi_reduction <add>, %119, %cst_48 [2] : vector<2x8x8xf32> to vector<2x8xf32>
    %121 = vector.shape_cast %120 : vector<2x8xf32> to vector<2x8x1xf32>
    %122 = tpu.reciprocal %121 {approx = true} : vector<2x8x1xf32> -> vector<2x8x1xf32>
    %123 = vector.broadcast %122 : vector<2x8x1xf32> to vector<2x8x8xf32>
    %124 = arith.mulf %119, %123 : vector<2x8x8xf32>
    %125 = arith.truncf %124 : vector<2x8x8xf32> to vector<2x8x8xbf16>
    "tpu.trace_start"() <{level = 10 : i32, message = "blm,bmd->bld"}> : () -> ()
    %cst_49 = arith.constant dense<0.000000e+00> : vector<2x8x8xf32>
    %126 = tpu.matmul %125, %113, %cst_49 {dimension_numbers = #tpu.dot_dimension_numbers<[2], [1], [1], [2], [0, 0, 0, 1, 1, 2], [0], [0]>} : vector<2x8x8xbf16>, vector<2x8x8xbf16>, vector<2x8x8xf32> -> vector<2x8x8xf32>
    "tpu.trace_stop"() : () -> ()
    %127 = vector.shape_cast %126 : vector<2x8x8xf32> to vector<16x8xf32>
    %128 = arith.truncf %127 : vector<16x8xf32> to vector<16x8xbf16>
    %c2_50 = arith.constant 2 : index
    %c0_51 = arith.constant 0 : index
    %c0_52 = arith.constant 0 : index
    %129 = vector.load %arg6[%c2_50, %c0_51, %c0_52] : memref<4x8x32xbf16, #tpu.memory_space<vmem>>, vector<1x8x32xbf16>
    %130 = vector.shape_cast %129 : vector<1x8x32xbf16> to vector<8x32xbf16>
    %cst_53 = arith.constant dense<0.000000e+00> : vector<16x32xf32>
    %131 = tpu.matmul %128, %130, %cst_53 {dimension_numbers = #tpu.dot_dimension_numbers<[1], [0], [0], [1], [0, 0, 1, 1], [], []>} : vector<16x8xbf16>, vector<8x32xbf16>, vector<16x32xf32> -> vector<16x32xf32>
    %132 = arith.addf %97, %131 : vector<16x32xf32>
    %c3 = arith.constant 3 : index
    %c0_54 = arith.constant 0 : index
    %c0_55 = arith.constant 0 : index
    %133 = vector.load %arg4[%c3, %c0_54, %c0_55] : memref<4x32x24xbf16, #tpu.memory_space<vmem>>, vector<1x32x24xbf16>
    %134 = vector.shape_cast %133 : vector<1x32x24xbf16> to vector<32x24xbf16>
    %cst_56 = arith.constant dense<0.000000e+00> : vector<16x24xf32>
    %135 = tpu.matmul %26, %134, %cst_56 {dimension_numbers = #tpu.dot_dimension_numbers<[1], [0], [0], [1], [0, 0, 1, 1], [], []>} : vector<16x32xbf16>, vector<32x24xbf16>, vector<16x24xf32> -> vector<16x24xf32>
    %c3_57 = arith.constant 3 : index
    %c0_58 = arith.constant 0 : index
    %c0_59 = arith.constant 0 : index
    %136 = vector.load %arg5[%c3_57, %c0_58, %c0_59] : memref<4x1x24xf32, #tpu.memory_space<vmem>>, vector<1x1x24xf32>
    %137 = vector.shape_cast %136 : vector<1x1x24xf32> to vector<1x24xf32>
    %138 = vector.broadcast %137 : vector<1x24xf32> to vector<16x24xf32>
    %139 = arith.addf %135, %138 : vector<16x24xf32>
    %140 = vector.extract_strided_slice %139 {offsets = [0, 0], sizes = [16, 8], strides = [1, 1]} : vector<16x24xf32> to vector<16x8xf32>
    %141 = vector.shape_cast %140 : vector<16x8xf32> to vector<2x8x8xf32>
    %142 = arith.truncf %141 : vector<2x8x8xf32> to vector<2x8x8xbf16>
    %143 = vector.extract_strided_slice %139 {offsets = [0, 8], sizes = [16, 8], strides = [1, 1]} : vector<16x24xf32> to vector<16x8xf32>
    %144 = vector.shape_cast %143 : vector<16x8xf32> to vector<2x8x8xf32>
    %145 = arith.truncf %144 : vector<2x8x8xf32> to vector<2x8x8xbf16>
    %146 = vector.extract_strided_slice %139 {offsets = [0, 16], sizes = [16, 8], strides = [1, 1]} : vector<16x24xf32> to vector<16x8xf32>
    %147 = vector.shape_cast %146 : vector<16x8xf32> to vector<2x8x8xf32>
    %148 = arith.truncf %147 : vector<2x8x8xf32> to vector<2x8x8xbf16>
    "tpu.trace_start"() <{level = 10 : i32, message = "bld,bmd->blm"}> : () -> ()
    %cst_60 = arith.constant dense<0.000000e+00> : vector<2x8x8xf32>
    %149 = tpu.matmul %142, %145, %cst_60 {dimension_numbers = #tpu.dot_dimension_numbers<[2], [2], [1], [1], [0, 0, 0, 1, 1, 1], [0], [0]>} : vector<2x8x8xbf16>, vector<2x8x8xbf16>, vector<2x8x8xf32> -> vector<2x8x8xf32>
    "tpu.trace_stop"() : () -> ()
    %cst_61 = arith.constant dense<0xFF800000> : vector<2x8xf32>
    %150 = vector.multi_reduction <maximumf>, %149, %cst_61 [2] : vector<2x8x8xf32> to vector<2x8xf32>
    %151 = vector.shape_cast %150 : vector<2x8xf32> to vector<2x8x1xf32>
    %152 = vector.broadcast %151 : vector<2x8x1xf32> to vector<2x8x8xf32>
    %153 = arith.subf %149, %152 : vector<2x8x8xf32>
    %154 = math.exp %153 : vector<2x8x8xf32>
    %cst_62 = arith.constant dense<0.000000e+00> : vector<2x8xf32>
    %155 = vector.multi_reduction <add>, %154, %cst_62 [2] : vector<2x8x8xf32> to vector<2x8xf32>
    %156 = vector.shape_cast %155 : vector<2x8xf32> to vector<2x8x1xf32>
    %157 = tpu.reciprocal %156 {approx = true} : vector<2x8x1xf32> -> vector<2x8x1xf32>
    %158 = vector.broadcast %157 : vector<2x8x1xf32> to vector<2x8x8xf32>
    %159 = arith.mulf %154, %158 : vector<2x8x8xf32>
    %160 = arith.truncf %159 : vector<2x8x8xf32> to vector<2x8x8xbf16>
    "tpu.trace_start"() <{level = 10 : i32, message = "blm,bmd->bld"}> : () -> ()
    %cst_63 = arith.constant dense<0.000000e+00> : vector<2x8x8xf32>
    %161 = tpu.matmul %160, %148, %cst_63 {dimension_numbers = #tpu.dot_dimension_numbers<[2], [1], [1], [2], [0, 0, 0, 1, 1, 2], [0], [0]>} : vector<2x8x8xbf16>, vector<2x8x8xbf16>, vector<2x8x8xf32> -> vector<2x8x8xf32>
    "tpu.trace_stop"() : () -> ()
    %162 = vector.shape_cast %161 : vector<2x8x8xf32> to vector<16x8xf32>
    %163 = arith.truncf %162 : vector<16x8xf32> to vector<16x8xbf16>
    %c3_64 = arith.constant 3 : index
    %c0_65 = arith.constant 0 : index
    %c0_66 = arith.constant 0 : index
    %164 = vector.load %arg6[%c3_64, %c0_65, %c0_66] : memref<4x8x32xbf16, #tpu.memory_space<vmem>>, vector<1x8x32xbf16>
    %165 = vector.shape_cast %164 : vector<1x8x32xbf16> to vector<8x32xbf16>
    %cst_67 = arith.constant dense<0.000000e+00> : vector<16x32xf32>
    %166 = tpu.matmul %163, %165, %cst_67 {dimension_numbers = #tpu.dot_dimension_numbers<[1], [0], [0], [1], [0, 0, 1, 1], [], []>} : vector<16x8xbf16>, vector<8x32xbf16>, vector<16x32xf32> -> vector<16x32xf32>
    %167 = arith.addf %132, %166 : vector<16x32xf32>
    %168 = arith.addf %1, %167 : vector<16x32xf32>
    %c0_68 = arith.constant 0 : index
    %c0_69 = arith.constant 0 : index
    %169 = vector.load %arg7[%c0_68, %c0_69] : memref<1x32xf32, #tpu.memory_space<vmem>>, vector<1x32xf32>
    %170 = vector.broadcast %169 : vector<1x32xf32> to vector<16x32xf32>
    %171 = arith.addf %168, %170 : vector<16x32xf32>
    %c0_70 = arith.constant 0 : index
    %c0_71 = arith.constant 0 : index
    %172 = vector.load %arg8[%c0_70, %c0_71] : memref<1x32xf32, #tpu.memory_space<vmem>>, vector<1x32xf32>
    %c0_72 = arith.constant 0 : index
    %c0_73 = arith.constant 0 : index
    %173 = vector.load %arg9[%c0_72, %c0_73] : memref<1x32xf32, #tpu.memory_space<vmem>>, vector<1x32xf32>
    %cst_74 = arith.constant dense<0.000000e+00> : vector<16xf32>
    %174 = vector.multi_reduction <add>, %171, %cst_74 [1] : vector<16x32xf32> to vector<16xf32>
    %175 = vector.shape_cast %174 : vector<16xf32> to vector<16x1xf32>
    %cst_75 = arith.constant 3.200000e+01 : f32
    %176 = vector.broadcast %cst_75 : f32 to vector<16x1xf32>
    %177 = arith.divf %175, %176 : vector<16x1xf32>
    %178 = vector.broadcast %177 : vector<16x1xf32> to vector<16x32xf32>
    %179 = arith.subf %171, %178 : vector<16x32xf32>
    %180 = arith.mulf %179, %179 : vector<16x32xf32>
    %cst_76 = arith.constant dense<0.000000e+00> : vector<16xf32>
    %181 = vector.multi_reduction <add>, %180, %cst_76 [1] : vector<16x32xf32> to vector<16xf32>
    %182 = vector.shape_cast %181 : vector<16xf32> to vector<16x1xf32>
    %cst_77 = arith.constant 3.200000e+01 : f32
    %183 = vector.broadcast %cst_77 : f32 to vector<16x1xf32>
    %184 = arith.divf %182, %183 : vector<16x1xf32>
    %185 = vector.broadcast %177 : vector<16x1xf32> to vector<16x32xf32>
    %186 = arith.subf %171, %185 : vector<16x32xf32>
    %cst_78 = arith.constant 9.99999974E-6 : f32
    %187 = vector.broadcast %cst_78 : f32 to vector<16x1xf32>
    %188 = arith.addf %184, %187 : vector<16x1xf32>
    %189 = math.rsqrt %188 : vector<16x1xf32>
    %190 = vector.broadcast %189 : vector<16x1xf32> to vector<16x32xf32>
    %191 = arith.mulf %186, %190 : vector<16x32xf32>
    %192 = vector.broadcast %172 : vector<1x32xf32> to vector<16x32xf32>
    %193 = arith.mulf %191, %192 : vector<16x32xf32>
    %194 = vector.broadcast %173 : vector<1x32xf32> to vector<16x32xf32>
    %195 = arith.addf %193, %194 : vector<16x32xf32>
    %196 = arith.truncf %195 : vector<16x32xf32> to vector<16x32xbf16>
    %c0_79 = arith.constant 0 : index
    %c0_80 = arith.constant 0 : index
    %197 = vector.load %arg10[%c0_79, %c0_80] : memref<32x64xbf16, #tpu.memory_space<vmem>>, vector<32x64xbf16>
    %cst_81 = arith.constant dense<0.000000e+00> : vector<16x64xf32>
    %198 = tpu.matmul %196, %197, %cst_81 {dimension_numbers = #tpu.dot_dimension_numbers<[1], [0], [0], [1], [0, 0, 1, 1], [], []>} : vector<16x32xbf16>, vector<32x64xbf16>, vector<16x64xf32> -> vector<16x64xf32>
    %c0_82 = arith.constant 0 : index
    %c0_83 = arith.constant 0 : index
    %199 = vector.load %arg11[%c0_82, %c0_83] : memref<1x64xf32, #tpu.memory_space<vmem>>, vector<1x64xf32>
    %200 = vector.broadcast %199 : vector<1x64xf32> to vector<16x64xf32>
    %201 = arith.addf %198, %200 : vector<16x64xf32>
    %cst_84 = arith.constant 5.000000e-01 : f32
    %202 = vector.broadcast %cst_84 : f32 to vector<16x64xf32>
    %203 = arith.mulf %202, %201 : vector<16x64xf32>
    %cst_85 = arith.constant 0.707106769 : f32
    %204 = vector.broadcast %cst_85 : f32 to vector<16x64xf32>
    %205 = arith.mulf %201, %204 : vector<16x64xf32>
    %206 = math.erf %205 : vector<16x64xf32>
    %cst_86 = arith.constant 1.000000e+00 : f32
    %207 = vector.broadcast %cst_86 : f32 to vector<16x64xf32>
    %208 = arith.addf %207, %206 : vector<16x64xf32>
    %209 = arith.mulf %203, %208 : vector<16x64xf32>
    %210 = arith.truncf %209 : vector<16x64xf32> to vector<16x64xbf16>
    %c0_87 = arith.constant 0 : index
    %c0_88 = arith.constant 0 : index
    %211 = vector.load %arg12[%c0_87, %c0_88] : memref<64x32xbf16, #tpu.memory_space<vmem>>, vector<64x32xbf16>
    %cst_89 = arith.constant dense<0.000000e+00> : vector<16x32xf32>
    %212 = tpu.matmul %210, %211, %cst_89 {dimension_numbers = #tpu.dot_dimension_numbers<[1], [0], [0], [1], [0, 0, 1, 1], [], []>} : vector<16x64xbf16>, vector<64x32xbf16>, vector<16x32xf32> -> vector<16x32xf32>
    %c0_90 = arith.constant 0 : index
    %c0_91 = arith.constant 0 : index
    %213 = vector.load %arg13[%c0_90, %c0_91] : memref<1x32xf32, #tpu.memory_space<vmem>>, vector<1x32xf32>
    %214 = vector.broadcast %213 : vector<1x32xf32> to vector<16x32xf32>
    %215 = arith.addf %212, %214 : vector<16x32xf32>
    %216 = arith.addf %171, %215 : vector<16x32xf32>
    %217 = vector.shape_cast %216 : vector<16x32xf32> to vector<2x8x32xf32>
    %c0_92 = arith.constant 0 : index
    %c0_93 = arith.constant 0 : index
    %c0_94 = arith.constant 0 : index
    %218 = vector.load %arg14[%c0_92, %c0_93, %c0_94] : memref<2x8x32xf32, #tpu.memory_space<vmem>>, vector<2x8x32xf32>
    tpu.vector_store %arg14[%c0_92, %c0_93, %c0_94], %217 {strides = array<i32>} : memref<2x8x32xf32, #tpu.memory_space<vmem>>, vector<2x8x32xf32>,
    return
  }
  func.func @transform_0(%arg0: i32) -> (i32, i32, i32) {
    %c0_i32 = arith.constant 0 : i32
    %c0_i32_0 = arith.constant 0 : i32
    %c0_i32_1 = arith.constant 0 : i32
    return %arg0, %c0_i32, %c0_i32_0 : i32, i32, i32
  }
  func.func @transform_1(%arg0: i32) -> (i32, i32) {
    %c0_i32 = arith.constant 0 : i32
    %c0_i32_0 = arith.constant 0 : i32
    %c0_i32_1 = arith.constant 0 : i32
    return %c0_i32, %c0_i32_0 : i32, i32
  }
  func.func @transform_2(%arg0: i32) -> (i32, i32) {
    %c0_i32 = arith.constant 0 : i32
    %c0_i32_0 = arith.constant 0 : i32
    %c0_i32_1 = arith.constant 0 : i32
    return %c0_i32, %c0_i32_0 : i32, i32
  }
  func.func @transform_3(%arg0: i32) -> (i32, i32, i32) {
    %c0_i32 = arith.constant 0 : i32
    %c0_i32_0 = arith.constant 0 : i32
    %c0_i32_1 = arith.constant 0 : i32
    %c0_i32_2 = arith.constant 0 : i32
    return %c0_i32, %c0_i32_0, %c0_i32_1 : i32, i32, i32
  }
  func.func @transform_4(%arg0: i32) -> (i32, i32, i32) {
    %c0_i32 = arith.constant 0 : i32
    %c0_i32_0 = arith.constant 0 : i32
    %c0_i32_1 = arith.constant 0 : i32
    %c0_i32_2 = arith.constant 0 : i32
    return %c0_i32, %c0_i32_0, %c0_i32_1 : i32, i32, i32
  }
  func.func @transform_5(%arg0: i32) -> (i32, i32, i32) {
    %c0_i32 = arith.constant 0 : i32
    %c0_i32_0 = arith.constant 0 : i32
    %c0_i32_1 = arith.constant 0 : i32
    %c0_i32_2 = arith.constant 0 : i32
    return %c0_i32, %c0_i32_0, %c0_i32_1 : i32, i32, i32
  }
  func.func @transform_6(%arg0: i32) -> (i32, i32) {
    %c0_i32 = arith.constant 0 : i32
    %c0_i32_0 = arith.constant 0 : i32
    %c0_i32_1 = arith.constant 0 : i32
    return %c0_i32, %c0_i32_0 : i32, i32
  }
  func.func @transform_7(%arg0: i32) -> (i32, i32) {
    %c0_i32 = arith.constant 0 : i32
    %c0_i32_0 = arith.constant 0 : i32
    %c0_i32_1 = arith.constant 0 : i32
    return %c0_i32, %c0_i32_0 : i32, i32
  }
  func.func @transform_8(%arg0: i32) -> (i32, i32) {
    %c0_i32 = arith.constant 0 : i32
    %c0_i32_0 = arith.constant 0 : i32
    %c0_i32_1 = arith.constant 0 : i32
    return %c0_i32, %c0_i32_0 : i32, i32
  }
  func.func @transform_9(%arg0: i32) -> (i32, i32) {
    %c0_i32 = arith.constant 0 : i32
    %c0_i32_0 = arith.constant 0 : i32
    %c0_i32_1 = arith.constant 0 : i32
    return %c0_i32, %c0_i32_0 : i32, i32
  }
  func.func @transform_10(%arg0: i32) -> (i32, i32) {
    %c0_i32 = arith.constant 0 : i32
    %c0_i32_0 = arith.constant 0 : i32
    %c0_i32_1 = arith.constant 0 : i32
    return %c0_i32, %c0_i32_0 : i32, i32
  }
  func.func @transform_11(%arg0: i32) -> (i32, i32) {
    %c0_i32 = arith.constant 0 : i32
    %c0_i32_0 = arith.constant 0 : i32
    %c0_i32_1 = arith.constant 0 : i32
    return %c0_i32, %c0_i32_0 : i32, i32
  }
  func.func @transform_12(%arg0: i32) -> (i32, i32) {
    %c0_i32 = arith.constant 0 : i32
    %c0_i32_0 = arith.constant 0 : i32
    %c0_i32_1 = arith.constant 0 : i32
    return %c0_i32, %c0_i32_0 : i32, i32
  }
  func.func @transform_13(%arg0: i32) -> (i32, i32, i32) {
    %c0_i32 = arith.constant 0 : i32
    %c0_i32_0 = arith.constant 0 : i32
    %c0_i32_1 = arith.constant 0 : i32
    return %arg0, %c0_i32, %c0_i32_0 : i32, i32, i32
  }
}

</mosaic_0001>

<bundles_post_ra>
// kernel: tpu_custom_call.1
= control target key start
LH: loop header
LB: loop body
LE: loop exit
PB: predicated region body
PF: predicated region fallthrough
CT: control target
= control target key end

     0   :  { %vm50_vm0 = vcmask 261120   ;;  %s2469_s0 = inlined_call_operand.vmem [shape: f32[2,8,32], index: 0, kind: input, shape index: {}]   ;;  %s2470_s1 = inlined_call_operand.vmem [shape: f32[1,32], index: 1, kind: input, shape index: {}]   ;;  %s2471_s2 = inlined_call_operand.vmem [shape: f32[1,32], index: 2, kind: input, shape index: {}]   ;;  %s2472_s3 = inlined_call_operand.vmem [shape: bf16[4,32,24], index: 3, kind: input, shape index: {}]   ;;  %s2473_s4 = inlined_call_operand.vmem [shape: f32[4,1,24], index: 4, kind: input, shape index: {}]   ;;  %s2474_s5 = inlined_call_operand.vmem [shape: bf16[4,8,32], index: 5, kind: input, shape index: {}]   ;;  %s2475_s6 = inlined_call_operand.vmem [shape: f32[1,32], index: 6, kind: input, shape index: {}]   ;;  %s2476_s7 = inlined_call_operand.vmem [shape: f32[1,32], index: 7, kind: input, shape index: {}]   ;;  %s2477_s8 = inlined_call_operand.vmem [shape: f32[1,32], index: 8, kind: input, shape index: {}]   ;;  %s2478_s9 = inlined_call_operand.vmem [shape: bf16[32,64], index: 9, kind: input, shape index: {}]   ;;  %s2479_s10 = inlined_call_operand.vmem [shape: f32[1,64], index: 10, kind: input, shape index: {}]   ;;  %s2480_s11 = inlined_call_operand.vmem [shape: bf16[64,32], index: 11, kind: input, shape index: {}]   ;;  %s2481_s12 = inlined_call_operand.vmem [shape: f32[1,32], index: 12, kind: input, shape index: {}]   ;;  %s2482_s13 = inlined_call_operand.hbm [shape: f32[2,8,32], index: 13, kind: output, shape index: {}]  }
   0x1   :  { %v2153_v0 = vld [vmem:[%s2469_s0] sm:$0xff]  ;;  %v2158_v1 = vld [vmem:[%s2469_s0 + $0x8] sm:$0xff] }
   0x2   :  { %v51_v2 = vsel %vm50_vm0, %v2153_v0, 0.0  ;;  %v54_v3 = vsel %vm50_vm0, %v2158_v1, 0.0 }
   0x3   :  { %52 = vadd.xlane.f32.xlu0 %v51_v2 }
   0x7   :  { %55 = vadd.xlane.f32.xlu0 %v54_v3 }
   0x8   :  { %18 = vsyncpa [#allocation3], 0  ;;  %v1991_v14 = vld [vmem:[%s2472_s3] sm:$0xff]   ;;  %v2073_v15 = vmov 0.0   ;;  %v1992_v16 = vld [vmem:[%s2472_s3 + $0x8] sm:$0xff]   ;;  %vm2074_vm1 = vmmov 0  }
   0x9   :  { %1812 = vmatprep.subr.bf16.mxu0 %v2073_v15  ;;  %1820 = vmatprep.subr.bf16.mxu1 %v2073_v15  ;;  %v1683_v25 = vld [vmem:[%s2470_s1] ss:$0 sm:$0xff]  ;;  %s2076_s20 = smov 112   ;;  %vm167_vm2 = vcmask 64512   ;;  %vm292_vm3 = vcmask 1043456   ;;  %v1993_v2 = vld [vmem:[%s2472_s3 + $0x10] sm:$0xff]  }
   0xa   :  { %1813 = vmatpush3.bf16.msra.mxu0 %v1991_v14  ;;  %1816 = vmatprep.mubr.msk.bf16.mxu0 %vm2074_vm1, %v2073_v15  ;;  %v1684_v29 = vld [vmem:[%s2471_s2] ss:$0 sm:$0xff]  ;;  %s2075_s2 = smov 120   ;;  %vm1618_vm4 = vcmask 523264   ;;  %s2077_s22 = smov [#allocation2]  }
   0xb   :  { %1814 = vmatprep.subr.bf16.mxu0 %v2073_v15  ;;  %1822 = vmatprep.mubr.msk.bf16.mxu1 %vm2074_vm1, %v2073_v15  ;;  %v1685_v34 = vld [vmem:[%s2473_s4] ss:$0 sm:$0xff] }
   0xe   :  { %1815 = vmatpush3.bf16.msra.mxu0 %v1992_v16 }
   0xf   :  { %1826 = vmatprep.subr.bf16.mxu0 %v2073_v15 }
  0x90   :  { %v53_v4 = vpop.xlane.xlu0 %52 }
  0x91   :  { %v58_v5 = vmul.f32 0.03125, %v53_v4  ;;  %v1994_v4 = vld [vmem:[%s2472_s3 + $0x18] sm:$0xff]  }
  0x93   :  { %v60_v6 = vsub.f32 %v2153_v0, %v58_v5 }
  0x94   :  { %v56_v7 = vpop.xlane.xlu0 %55 }
  0x95   :  { %v59_v8 = vmul.f32 0.03125, %v56_v7  ;;  %v62_v9 = vmul.f32 %v60_v6, %v60_v6 }
  0x97   :  { %v61_v10 = vsub.f32 %v2158_v1, %v59_v8  ;;  %v64_v11 = vsel %vm50_vm0, %v62_v9, 0.0 }
  0x98   :  { %65 = vadd.xlane.f32.xlu1 %v64_v11 }
  0x99   :  { %v63_v12 = vmul.f32 %v61_v10, %v61_v10 }
  0x9b   :  { %v67_v13 = vsel %vm50_vm0, %v63_v12, 0.0 }
  0x9c   :  { %68 = vadd.xlane.f32.xlu1 %v67_v13 }
 0x125   :  { %v66_v17 = vpop.xlane.xlu1 %65 }
 0x126   :  { %v70_v18 = vmul.f32 0.03125, %v66_v17 }
 0x128   :  { %v72_v19 = vadd.f32 1e-05, %v70_v18 }
 0x129   :  { %v69_v20 = vpop.xlane.xlu1 %68 }
 0x12a   :  { %2005 = vrsqrt.f32 %v72_v19  ;;  %v71_v21 = vmul.f32 0.03125, %v69_v20 }
 0x12c   :  { %v73_v22 = vadd.f32 1e-05, %v71_v21 }
 0x12e   :  { %2007 = vrsqrt.f32 %v73_v22  ;;  %v1698_v22 = vld [vmem:[%s2473_s4 + $0x1] ss:$0 sm:$0xff] }
 0x134   :  { %v2006_v23 = vpop.eup %2005 }
 0x135   :  { %v76_v24 = vmul.f32 %v2006_v23, %v60_v6 }
 0x137   :  { %v84_v28 = vmul.f32 %v1683_v25, %v76_v24 }
 0x138   :  { %v2008_v26 = vpop.eup %2007 }
 0x139   :  { %v77_v27 = vmul.f32 %v2008_v26, %v61_v10  ;;  %v92_v31 = vadd.f32 %v1684_v29, %v84_v28 }
 0x13b   :  { %v85_v30 = vmul.f32 %v1683_v25, %v77_v27 }
 0x13d   :  { %v93_v32 = vadd.f32 %v1684_v29, %v85_v30 }
 0x13f   :  { %v2188_v33 = vpack.c.bf16 %v93_v32, %v92_v31 }
 0x141   :  { %1817 = vmatmul.mubr.msk.bf16.vlgmr.msra.gmra.mrb[0].mxu0 %vm50_vm0, %v2188_v33 }
 0x142   :  { %1828 = vmatprep.mubr.msk.bf16.mxu0 %vm2074_vm1, %v2073_v15 }
 0x214   :  { %v155_v35 = vpop.f32.mrb[0].mxu0 }
 0x215   :  { %v156_v36 = vadd.f32 %v1685_v34, %v155_v35  ;;  %v1818_v37 = vpop.f32.mrb[1].mxu0 }
 0x216   :  { %v158_v38 = vpop.f32.mrb[2].mxu0 }
 0x217   :  { %v162_v39 = vpack.c.bf16 %v156_v36, %v156_v36  ;;  %v159_v40 = vadd.f32 %v1685_v34, %v158_v38  ;;  %v1819_v41 = vpop.f32.mrb[3].mxu0 }
 0x219   :  { %165 = vrot.lane.b32.xlu0 %v162_v39, %s2075_s2  ;;  %v163_v51 = vpack.c.bf16 %v159_v40, %v159_v40 }
 0x21d   :  { %287 = vrot.lane.b32.xlu0 %v162_v39, %s2076_s20 }
 0x28b   :  { %v166_v42 = vpop.permute.xlu0 %165 }
 0x28c   :  { %v172_v43 = vsel %vm167_vm2, %v166_v42, 0 }
 0x28d   :  { %1821 = vmatpush3.bf16.xpose.msra.mxu1 %v172_v43 }
 0x28e   :  { %1832 = vmatprep.subr.bf16.mxu1 %v2073_v15 }
 0x28f   :  { %v288_v44 = vpop.permute.xlu0 %287 }
 0x290   :  { %v294_v45 = vsel %vm292_vm3, %v288_v44, 0 }
 0x294   :  { %1823 = vmatmul.mubr.msk.bf16.vlgmr.msra.gmra.mrb[0].mxu1 %vm167_vm2, %v162_v39 }
 0x295   :  { %1833 = vmatpush3.bf16.msra.mxu1 %v294_v45  ;;  %1834 = vmatprep.mubr.msk.bf16.mxu1 %vm2074_vm1, %v2073_v15 }
 0x296   :  { %1844 = vmatprep.subr.bf16.mxu1 %v2073_v15 }
 0x367   :  { %v208_v46 = vpop.f32.mrb[0].mxu1 }
 0x368   :  { %v1824_v47 = vpop.f32.mrb[1].mxu1  ;;  %v263_v48 = vsel %vm167_vm2, %v208_v46, -inf }
 0x369   :  { %264 = vmax.xlane.f32.xlu1 %v263_v48  ;;  %v211_v49 = vpop.f32.mrb[2].mxu1 }
 0x36a   :  { %v1825_v50 = vpop.f32.mrb[3].mxu1 }
 0x37a   :  { %215 = vrot.lane.b32.xlu1 %v163_v51, %s2075_s2 }
 0x3f6   :  { %v265_v52 = vpop.xlane.xlu1 %264 }
 0x3f7   :  { %v269_v53 = vsub.f32 %v208_v46, %v265_v52 }
 0x3f9   :  { %v271_v54 = vmul.f32 1.442695, %v269_v53 }
 0x3fa   :  { %v216_v55 = vpop.permute.xlu1 %215 }
 0x3fb   :  { %2009 = vpow2.f32 %v271_v54  ;;  %v221_v56 = vsel %vm167_vm2, %v216_v55, 0 }
 0x3fc   :  { %1827 = vmatpush3.bf16.xpose.msra.mxu0 %v221_v56 }
 0x3fd   :  { %1838 = vmatprep.subr.bf16.mxu0 %v2073_v15 }
 0x403   :  { %1829 = vmatmul.mubr.msk.bf16.vlgmr.msra.gmra.mrb[4].mxu0 %vm167_vm2, %v163_v51 }
 0x404   :  { %1840 = vmatprep.mubr.msk.bf16.mxu0 %vm2074_vm1, %v2073_v15 }
 0x405   :  { %v2010_v57 = vpop.eup %2009 }
 0x406   :  { %v275_v58 = vsel %vm167_vm2, %v2010_v57, 0.0 }
 0x407   :  { %276 = vadd.xlane.f32.xlu1 %v275_v58 }
 0x418   :  { %336 = vrot.lane.b32.xlu1 %v163_v51, %s2076_s20 }
 0x494   :  { %v277_v59 = vpop.xlane.xlu1 %276 }
 0x495   :  { %2011 = vrcp.f32 %v277_v59 }
 0x498   :  { %v337_v60 = vpop.permute.xlu1 %336 }
 0x499   :  { %v342_v61 = vsel %vm292_vm3, %v337_v60, 0 }
 0x49a   :  { %1839 = vmatpush3.bf16.msra.mxu0 %v342_v61 }
 0x49b   :  { %1852 = vmatprep.subr.bf16.mxu0 %v2073_v15 }
 0x49f   :  { %v2012_v62 = vpop.eup %2011 }
 0x4a0   :  { %v283_v63 = vmul.f32 %v2012_v62, %v2010_v57 }
 0x4a2   :  { %v285_v3 = vpack.c.bf16 %v283_v63, %v283_v63 }
 0x4a4   :  { %1835 = vmatmul.mubr.msk.bf16.vlgmr.msra.gmra.mrb[4].mxu1 %vm167_vm2, %v285_v3 }
 0x4a5   :  { %1845 = vmatpush3.bf16.msra.mxu1 %v1993_v2  ;;  %1848 = vmatprep.mubr.msk.bf16.mxu1 %vm2074_vm1, %v2073_v15 }
 0x4a6   :  { %1846 = vmatprep.subr.bf16.mxu1 %v2073_v15 }
 0x4a9   :  { %1847 = vmatpush3.bf16.msra.mxu1 %v1994_v4 }
 0x4aa   :  { %1858 = vmatprep.subr.bf16.mxu1 %v2073_v15 }
 0x4ac   :  { %1849 = vmatmul.mubr.msk.bf16.vlgmr.msra.gmra.mrb[8].mxu1 %vm50_vm0, %v2188_v33 }
 0x4ad   :  { %1860 = vmatprep.mubr.msk.bf16.mxu1 %vm2074_vm1, %v2073_v15 }
 0x4d6   :  { %v257_v5 = vpop.f32.mrb[4].mxu0 }
 0x4d7   :  { %v1830_v6 = vpop.f32.mrb[5].mxu0  ;;  %v266_v7 = vsel %vm167_vm2, %v257_v5, -inf }
 0x4d8   :  { %267 = vmax.xlane.f32.xlu0 %v266_v7  ;;  %v260_v8 = vpop.f32.mrb[6].mxu0 }
 0x4d9   :  { %v1831_v9 = vpop.f32.mrb[7].mxu0 }
 0x565   :  { %v268_v10 = vpop.xlane.xlu0 %267 }
 0x566   :  { %v270_v11 = vsub.f32 %v257_v5, %v268_v10  ;;  %v385_v5 = vld [vmem:[%s2474_s5] sm:$0xf] }
 0x567   :  { %v726_v8 = vsel %vm292_vm3, %v385_v5, 0 }
 0x568   :  { %v273_v12 = vmul.f32 1.442695, %v270_v11 }
 0x56a   :  { %2013 = vpow2.f32 %v273_v12 }
 0x574   :  { %v2014_v13 = vpop.eup %2013 }
 0x575   :  { %v278_v14 = vsel %vm167_vm2, %v2014_v13, 0.0 }
 0x576   :  { %279 = vadd.xlane.f32.xlu0 %v278_v14 }
 0x577   :  { %v2234_v16 = vpop.f32.mrb[4].mxu1 }
 0x578   :  { %v1836_v17 = vpop.f32.mrb[5].mxu1 }
 0x579   :  { %v333_v18 = vpop.f32.mrb[6].mxu1 }
 0x57a   :  { %v1837_v19 = vpop.f32.mrb[7].mxu1 }
 0x57f   :  { %v445_v20 = vpop.f32.mrb[8].mxu1 }
 0x580   :  { %v1850_v21 = vpop.f32.mrb[9].mxu1  ;;  %v446_v27 = vadd.f32 %v1698_v22, %v445_v20 }
 0x581   :  { %v448_v23 = vpop.f32.mrb[10].mxu1 }
 0x582   :  { %v449_v24 = vadd.f32 %v1698_v22, %v448_v23  ;;  %v1851_v25 = vpop.f32.mrb[11].mxu1  ;;  %v452_v28 = vpack.c.bf16 %v446_v27, %v446_v27  ;;  %v1995_v27 = vld [vmem:[%s2472_s3 + $0x20] sm:$0xff]  }
 0x584   :  { %v453_v26 = vpack.c.bf16 %v449_v24, %v449_v24 }
 0x586   :  { %504 = vrot.lane.b32.xlu1 %v453_v26, %s2075_s2 }
 0x58c   :  { %455 = vrot.lane.b32.xlu0 %v452_v28, %s2075_s2 }
 0x5f8   :  { %v505_v29 = vpop.permute.xlu1 %504 }
 0x5f9   :  { %v510_v30 = vsel %vm167_vm2, %v505_v29, 0 }
 0x5fa   :  { %1859 = vmatpush3.bf16.xpose.msra.mxu1 %v510_v30 }
 0x5fb   :  { %1870 = vmatprep.subr.bf16.mxu1 %v2073_v15 }
 0x601   :  { %1861 = vmatmul.mubr.msk.bf16.vlgmr.msra.gmra.mrb[12].mxu1 %vm167_vm2, %v453_v26 }
 0x602   :  { %1872 = vmatprep.mubr.msk.bf16.mxu1 %vm2074_vm1, %v2073_v15 }
 0x603   :  { %v280_v31 = vpop.xlane.xlu0 %279 }
 0x604   :  { %2015 = vrcp.f32 %v280_v31 }
 0x607   :  { %v456_v35 = vpop.permute.xlu0 %455 }
 0x608   :  { %v461_v37 = vsel %vm167_vm2, %v456_v35, 0 }
 0x60e   :  { %v2016_v32 = vpop.eup %2015 }
 0x60f   :  { %v284_v34 = vmul.f32 %v2016_v32, %v2014_v13  ;;  %v1996_v32 = vld [vmem:[%s2472_s3 + $0x28] sm:$0xff]  }
 0x611   :  { %v286_v36 = vpack.c.bf16 %v284_v34, %v284_v34 }
 0x613   :  { %1841 = vmatmul.mubr.msk.bf16.vlgmr.msra.gmra.mrb[8].mxu0 %vm167_vm2, %v286_v36 }
 0x614   :  { %1853 = vmatpush3.bf16.xpose.msra.mxu0 %v461_v37  ;;  %1854 = vmatprep.mubr.msk.bf16.mxu0 %vm2074_vm1, %v2073_v15 }
 0x615   :  { %1864 = vmatprep.subr.bf16.mxu0 %v2073_v15 }
 0x61b   :  { %1855 = vmatmul.mubr.msk.bf16.vlgmr.msra.gmra.mrb[12].mxu0 %vm167_vm2, %v452_v28 }
 0x61c   :  { %1866 = vmatprep.mubr.msk.bf16.mxu0 %vm2074_vm1, %v2073_v15 }
 0x6d4   :  { %v546_v38 = vpop.f32.mrb[12].mxu1 }
 0x6d5   :  { %v1862_v39 = vpop.f32.mrb[13].mxu1  ;;  %v555_v40 = vsel %vm167_vm2, %v546_v38, -inf }
 0x6d6   :  { %v549_v41 = vpop.f32.mrb[14].mxu1  ;;  %556 = vmax.xlane.f32.xlu0 %v555_v40 }
 0x6d7   :  { %v1863_v42 = vpop.f32.mrb[15].mxu1 }
 0x6d8   :  { %v1714_v42 = vld [vmem:[%s2473_s4 + $0x2] ss:$0 sm:$0xff] }
 0x6e6   :  { %v378_v43 = vpop.f32.mrb[8].mxu0 }
 0x6e7   :  { %v384_v44 = vpack.c.bf16 %v378_v43, %v2234_v16  ;;  %v1842_v45 = vpop.f32.mrb[9].mxu0  ;;  %v1706_v16 = vld [vmem:[%s2474_s5 + $0x4] sm:$0xf] }
 0x6e8   :  { %v381_v46 = vpop.f32.mrb[10].mxu0  ;;  %v679_v17 = vsel %vm292_vm3, %v1706_v16, 0 }
 0x6e9   :  { %v1843_v47 = vpop.f32.mrb[11].mxu0 }
 0x6ee   :  { %v497_v48 = vpop.f32.mrb[12].mxu0 }
 0x6ef   :  { %v1856_v49 = vpop.f32.mrb[13].mxu0  ;;  %v552_v50 = vsel %vm167_vm2, %v497_v48, -inf }
 0x6f0   :  { %553 = vmax.xlane.f32.xlu1 %v552_v50  ;;  %v500_v51 = vpop.f32.mrb[14].mxu0 }
 0x6f1   :  { %v1857_v52 = vpop.f32.mrb[15].mxu0 }
 0x763   :  { %v557_v53 = vpop.xlane.xlu0 %556 }
 0x764   :  { %v559_v54 = vsub.f32 %v546_v38, %v557_v53 }
 0x766   :  { %v562_v55 = vmul.f32 1.442695, %v559_v54 }
 0x768   :  { %2017 = vpow2.f32 %v562_v55 }
 0x772   :  { %v2018_v56 = vpop.eup %2017 }
 0x773   :  { %v567_v57 = vsel %vm167_vm2, %v2018_v56, 0.0 }
 0x774   :  { %568 = vadd.xlane.f32.xlu1 %v567_v57 }
 0x77d   :  { %v554_v58 = vpop.xlane.xlu1 %553 }
 0x77e   :  { %v558_v59 = vsub.f32 %v497_v48, %v554_v58 }
 0x780   :  { %v560_v60 = vmul.f32 1.442695, %v558_v59 }
 0x782   :  { %2019 = vpow2.f32 %v560_v60 }
 0x785   :  { %624 = vrot.lane.b32.xlu1 %v453_v26, %s2076_s20 }
 0x78c   :  { %v2020_v61 = vpop.eup %2019 }
 0x78d   :  { %v564_v62 = vsel %vm167_vm2, %v2020_v61, 0.0 }
 0x78e   :  { %565 = vadd.xlane.f32.xlu0 %v564_v62 }
 0x7a4   :  { %576 = vrot.lane.b32.xlu0 %v452_v28, %s2076_s20 }
 0x801   :  { %v569_v63 = vpop.xlane.xlu1 %568 }
 0x802   :  { %2021 = vrcp.f32 %v569_v63 }
 0x805   :  { %v625_v2 = vpop.permute.xlu1 %624 }
 0x806   :  { %v630_v3 = vsel %vm292_vm3, %v625_v2, 0 }
 0x807   :  { %1871 = vmatpush3.bf16.msra.mxu1 %v630_v3 }
 0x808   :  { %1882 = vmatprep.subr.bf16.mxu1 %v2073_v15 }
 0x80c   :  { %v2022_v4 = vpop.eup %2021 }
 0x80d   :  { %v573_v6 = vmul.f32 %v2022_v4, %v2018_v56 }
 0x80f   :  { %v575_v7 = vpack.c.bf16 %v573_v6, %v573_v6 }
 0x811   :  { %1873 = vmatmul.mubr.msk.bf16.vlgmr.msra.gmra.mrb[16].mxu1 %vm167_vm2, %v575_v7 }
 0x812   :  { %1883 = vmatpush3.bf16.msra.mxu1 %v726_v8  ;;  %1884 = vmatprep.mubr.msk.bf16.mxu1 %vm2074_vm1, %v2073_v15 }
 0x813   :  { %1896 = vmatprep.subr.bf16.mxu1 %v2073_v15 }
 0x819   :  { %1885 = vmatmul.mubr.msk.bf16.vlgmr.msra.gmra.mrb[20].mxu1 %vm167_vm2, %v384_v44 }
 0x81a   :  { %1898 = vmatprep.mubr.msk.bf16.mxu1 %vm2074_vm1, %v2073_v15 }
 0x81b   :  { %v566_v9 = vpop.xlane.xlu0 %565 }
 0x81c   :  { %2023 = vrcp.f32 %v566_v9 }
 0x81f   :  { %v577_v10 = vpop.permute.xlu0 %576 }
 0x820   :  { %v582_v11 = vsel %vm292_vm3, %v577_v10, 0 }
 0x821   :  { %1865 = vmatpush3.bf16.msra.mxu0 %v582_v11 }
 0x822   :  { %1876 = vmatprep.subr.bf16.mxu0 %v2073_v15 }
 0x826   :  { %v2024_v12 = vpop.eup %2023 }
 0x827   :  { %v572_v13 = vmul.f32 %v2024_v12, %v2020_v61 }
 0x829   :  { %v574_v14 = vpack.c.bf16 %v572_v13, %v572_v13 }
 0x82b   :  { %1867 = vmatmul.mubr.msk.bf16.vlgmr.msra.gmra.mrb[16].mxu0 %vm167_vm2, %v574_v14 }
 0x82c   :  { %1878 = vmatprep.mubr.msk.bf16.mxu0 %vm2074_vm1, %v2073_v15  ;;  %1877 = vmatpush3.bf16.msra.mxu0 %v679_v17 }
 0x82d   :  { %1888 = vmatprep.subr.bf16.mxu0 %v2073_v15 }
 0x8e4   :  { %v666_v18 = vpop.f32.mrb[16].mxu1 }
 0x8e5   :  { %v1874_v19 = vpop.f32.mrb[17].mxu1 }
 0x8e6   :  { %v669_v20 = vpop.f32.mrb[18].mxu1 }
 0x8e7   :  { %v1875_v21 = vpop.f32.mrb[19].mxu1  ;;  %v1997_v20 = vld [vmem:[%s2472_s3 + $0x30] sm:$0xff]  }
 0x8ec   :  { %v762_v22 = vpop.f32.mrb[20].mxu1 }
 0x8ed   :  { %v1886_v23 = vpop.f32.mrb[21].mxu1 }
 0x8ee   :  { %v765_v24 = vpop.f32.mrb[22].mxu1 }
 0x8ef   :  { %v1887_v25 = vpop.f32.mrb[23].mxu1 }
 0x8fe   :  { %v618_v26 = vpop.f32.mrb[16].mxu0 }
 0x8ff   :  { %v672_v28 = vpack.c.bf16 %v666_v18, %v618_v26  ;;  %v1868_v29 = vpop.f32.mrb[17].mxu0  ;;  %v1722_v26 = vld [vmem:[%s2474_s5 + $0x8] sm:$0xf] }
 0x900   :  { %v621_v30 = vpop.f32.mrb[18].mxu0 }
 0x901   :  { %v1869_v31 = vpop.f32.mrb[19].mxu0  ;;  %1879 = vmatmul.mubr.msk.bf16.vlgmr.msra.gmra.mrb[20].mxu0 %vm167_vm2, %v672_v28 }
 0x902   :  { %1889 = vmatpush3.bf16.msra.mxu0 %v1995_v27  ;;  %1892 = vmatprep.mubr.msk.bf16.mxu0 %vm2074_vm1, %v2073_v15  ;;  %v1062_v27 = vsel %vm292_vm3, %v1722_v26, 0 }
 0x903   :  { %1890 = vmatprep.subr.bf16.mxu0 %v2073_v15 }
 0x906   :  { %1891 = vmatpush3.bf16.msra.mxu0 %v1996_v32 }
 0x907   :  { %1902 = vmatprep.subr.bf16.mxu0 %v2073_v15 }
 0x909   :  { %1893 = vmatmul.mubr.msk.bf16.vlgmr.msra.gmra.mrb[24].mxu0 %vm50_vm0, %v2188_v33 }
 0x90a   :  { %1904 = vmatprep.mubr.msk.bf16.mxu0 %vm2074_vm1, %v2073_v15 }
 0x9d4   :  { %v715_v34 = vpop.f32.mrb[20].mxu0 }
 0x9d5   :  { %v2299_v35 = vadd.f32 %v762_v22, %v715_v34  ;;  %v1880_v36 = vpop.f32.mrb[21].mxu0 }
 0x9d6   :  { %v718_v37 = vpop.f32.mrb[22].mxu0 }
 0x9d7   :  { %v2301_v38 = vadd.f32 %v765_v24, %v718_v37  ;;  %v1881_v39 = vpop.f32.mrb[23].mxu0  ;;  %v1998_v24 = vld [vmem:[%s2472_s3 + $0x38] sm:$0xff]   ;;  %v1729_v37 = vld [vmem:[%s2473_s4 + $0x3] ss:$0 sm:$0xff]  ;;  %s1672_s3 = sshll.u32 %s2077_s22, 4  ;;  %s1673_s3 = int_to_ptr.vmem [resolvable:$true] %s1672_s3 }
 0x9d8   :  { %s2049_s23 = scalar_lea.vmem %s1673_s3, 256  ;;  %p2054_p1 = scmp.lt.s32.totalorder %s1673_s3, %s1673_s3 }
 0x9d9   :  { %p2050_p0 = scmp.ne.s32.totalorder %s1673_s3, %s2049_s23  ;;  %p2055_p2 = scmp.lt.s32.totalorder %s2049_s23, %s2049_s23 }
 0x9db   :  { %p2056_p3 = por %p2055_p2, %p2054_p1 }
 0x9dc   :  { %v828_v40 = vpop.f32.mrb[24].mxu0 }
 0x9dd   :  { %v1894_v41 = vpop.f32.mrb[25].mxu0  ;;  %v829_v46 = vadd.f32 %v1714_v42, %v828_v40  ;;  %p2057_p4 = pnand %p2056_p3, %p2050_p0 }
 0x9de   :  { %v831_v43 = vpop.f32.mrb[26].mxu0 }
 0x9df   :  { %v832_v44 = vadd.f32 %v1714_v42, %v831_v43  ;;  %v1895_v45 = vpop.f32.mrb[27].mxu0  ;;  %v835_v48 = vpack.c.bf16 %v829_v46, %v829_v46 }
 0x9e1   :  { %v836_v47 = vpack.c.bf16 %v832_v44, %v832_v44 }
 0x9e3   :  { %887 = vrot.lane.b32.xlu1 %v836_v47, %s2075_s2 }
 0x9e7   :  { %838 = vrot.lane.b32.xlu1 %v835_v48, %s2075_s2 }
 0xa55   :  { %v888_v49 = vpop.permute.xlu1 %887 }
 0xa56   :  { %v893_v50 = vsel %vm167_vm2, %v888_v49, 0 }
 0xa57   :  { %1903 = vmatpush3.bf16.xpose.msra.mxu0 %v893_v50 }
 0xa58   :  { %1914 = vmatprep.subr.bf16.mxu0 %v2073_v15 }
 0xa59   :  { %v839_v51 = vpop.permute.xlu1 %838 }
 0xa5a   :  { %v844_v52 = vsel %vm167_vm2, %v839_v51, 0 }
 0xa5b   :  { %1897 = vmatpush3.bf16.xpose.msra.mxu1 %v844_v52 }
 0xa5c   :  { %1908 = vmatprep.subr.bf16.mxu1 %v2073_v15 }
 0xa5e   :  { %1905 = vmatmul.mubr.msk.bf16.vlgmr.msra.gmra.mrb[28].mxu0 %vm167_vm2, %v836_v47 }
 0xa5f   :  { %1916 = vmatprep.mubr.msk.bf16.mxu0 %vm2074_vm1, %v2073_v15 }
 0xa62   :  { %1899 = vmatmul.mubr.msk.bf16.vlgmr.msra.gmra.mrb[24].mxu1 %vm167_vm2, %v835_v48 }
 0xa63   :  { %1910 = vmatprep.mubr.msk.bf16.mxu1 %vm2074_vm1, %v2073_v15 }
 0xb31   :  { %v929_v53 = vpop.f32.mrb[28].mxu0 }
 0xb32   :  { %v1906_v54 = vpop.f32.mrb[29].mxu0  ;;  %v938_v55 = vsel %vm167_vm2, %v929_v53, -inf }
 0xb33   :  { %939 = vmax.xlane.f32.xlu0 %v938_v55  ;;  %v932_v56 = vpop.f32.mrb[30].mxu0 }
 0xb34   :  { %v1907_v57 = vpop.f32.mrb[31].mxu0 }
 0xb35   :  { %v880_v58 = vpop.f32.mrb[24].mxu1 }
 0xb36   :  { %v1900_v59 = vpop.f32.mrb[25].mxu1  ;;  %v935_v60 = vsel %vm167_vm2, %v880_v58, -inf }
 0xb37   :  { %936 = vmax.xlane.f32.xlu1 %v935_v60  ;;  %v883_v61 = vpop.f32.mrb[26].mxu1 }
 0xb38   :  { %v1901_v62 = vpop.f32.mrb[27].mxu1 }
 0xbc0   :  { %v940_v63 = vpop.xlane.xlu0 %939 }
 0xbc1   :  { %v942_v2 = vsub.f32 %v929_v53, %v940_v63 }
 0xbc3   :  { %v945_v3 = vmul.f32 1.442695, %v942_v2 }
 0xbc4   :  { %v937_v4 = vpop.xlane.xlu1 %936 }
 0xbc5   :  { %2025 = vpow2.f32 %v945_v3  ;;  %v941_v5 = vsub.f32 %v880_v58, %v937_v4 }
 0xbc7   :  { %v943_v6 = vmul.f32 1.442695, %v941_v5 }
 0xbc9   :  { %2027 = vpow2.f32 %v943_v6 }
 0xbcf   :  { %v2026_v7 = vpop.eup %2025 }
 0xbd0   :  { %v950_v8 = vsel %vm167_vm2, %v2026_v7, 0.0 }
 0xbd1   :  { %951 = vadd.xlane.f32.xlu0 %v950_v8 }
 0xbd3   :  { %v2028_v9 = vpop.eup %2027 }
 0xbd4   :  { %v947_v10 = vsel %vm167_vm2, %v2028_v9, 0.0 }
 0xbd5   :  { %948 = vadd.xlane.f32.xlu1 %v947_v10 }
 0xbe6   :  { %959 = vrot.lane.b32.xlu1 %v835_v48, %s2076_s20 }
 0xbe7   :  { %1007 = vrot.lane.b32.xlu0 %v836_v47, %s2076_s20 }
 0xc5e   :  { %v952_v11 = vpop.xlane.xlu0 %951 }
 0xc5f   :  { %2029 = vrcp.f32 %v952_v11 }
 0xc62   :  { %v949_v12 = vpop.xlane.xlu1 %948  ;;  %v1008_v13 = vpop.permute.xlu0 %1007 }
 0xc63   :  { %2031 = vrcp.f32 %v949_v12  ;;  %v1013_v14 = vsel %vm292_vm3, %v1008_v13, 0 }
 0xc64   :  { %1915 = vmatpush3.bf16.msra.mxu0 %v1013_v14 }
 0xc65   :  { %1926 = vmatprep.subr.bf16.mxu0 %v2073_v15 }
 0xc66   :  { %v960_v16 = vpop.permute.xlu1 %959 }
 0xc67   :  { %v965_v17 = vsel %vm292_vm3, %v960_v16, 0 }
 0xc68   :  { %1909 = vmatpush3.bf16.msra.mxu1 %v965_v17 }
 0xc69   :  { %v2030_v18 = vpop.eup %2029  ;;  %1920 = vmatprep.subr.bf16.mxu1 %v2073_v15 }
 0xc6a   :  { %v956_v19 = vmul.f32 %v2030_v18, %v2026_v7 }
 0xc6c   :  { %v958_v21 = vpack.c.bf16 %v956_v19, %v956_v19 }
 0xc6d   :  { %v2032_v22 = vpop.eup %2031 }
 0xc6e   :  { %v955_v23 = vmul.f32 %v2032_v22, %v2028_v9  ;;  %1917 = vmatmul.mubr.msk.bf16.vlgmr.msra.gmra.mrb[32].mxu0 %vm167_vm2, %v958_v21 }
 0xc6f   :  { %1927 = vmatpush3.bf16.msra.mxu0 %v1997_v20  ;;  %1930 = vmatprep.mubr.msk.bf16.mxu0 %vm2074_vm1, %v2073_v15 }
 0xc70   :  { %v957_v25 = vpack.c.bf16 %v955_v23, %v955_v23  ;;  %1928 = vmatprep.subr.bf16.mxu0 %v2073_v15 }
 0xc72   :  { %1911 = vmatmul.mubr.msk.bf16.vlgmr.msra.gmra.mrb[28].mxu1 %vm167_vm2, %v957_v25 }
 0xc73   :  { %1929 = vmatpush3.bf16.msra.mxu0 %v1998_v24  ;;  %1922 = vmatprep.mubr.msk.bf16.mxu1 %vm2074_vm1, %v2073_v15 }
 0xc74   :  { %1940 = vmatprep.subr.bf16.mxu0 %v2073_v15  ;;  %1921 = vmatpush3.bf16.msra.mxu1 %v1062_v27  ;;  %v1737_v27 = vld [vmem:[%s2474_s5 + $0xc] sm:$0xf] }
 0xc75   :  { %1934 = vmatprep.subr.bf16.mxu1 %v2073_v15 }
 0xc76   :  { %1931 = vmatmul.mubr.msk.bf16.vlgmr.msra.gmra.mrb[36].mxu0 %vm50_vm0, %v2188_v33 }
 0xc77   :  { %1942 = vmatprep.mubr.msk.bf16.mxu0 %vm2074_vm1, %v2073_v15 }
 0xd41   :  { %v1049_v28 = vpop.f32.mrb[32].mxu0 }
 0xd42   :  { %v1918_v29 = vpop.f32.mrb[33].mxu0 }
 0xd43   :  { %v1052_v30 = vpop.f32.mrb[34].mxu0 }
 0xd44   :  { %v1919_v31 = vpop.f32.mrb[35].mxu0 }
 0xd45   :  { %v1001_v32 = vpop.f32.mrb[28].mxu1 }
 0xd46   :  { %v1055_v34 = vpack.c.bf16 %v1049_v28, %v1001_v32  ;;  %v1912_v36 = vpop.f32.mrb[29].mxu1  ;;  %v1400_v28 = vsel %vm292_vm3, %v1737_v27, 0 }
 0xd47   :  { %v1004_v33 = vpop.f32.mrb[30].mxu1 }
 0xd48   :  { %v1913_v39 = vpop.f32.mrb[31].mxu1  ;;  %1923 = vmatmul.mubr.msk.bf16.vlgmr.msra.gmra.mrb[32].mxu1 %vm167_vm2, %v1055_v34 }
 0xd49   :  { %v1166_v40 = vpop.f32.mrb[36].mxu0  ;;  %1936 = vmatprep.mubr.msk.bf16.mxu1 %vm2074_vm1, %v2073_v15 }
 0xd4a   :  { %v1167_v41 = vadd.f32 %v1729_v37, %v1166_v40  ;;  %v1932_v42 = vpop.f32.mrb[37].mxu0 }
 0xd4b   :  { %v1169_v43 = vpop.f32.mrb[38].mxu0 }
 0xd4c   :  { %v1173_v44 = vpack.c.bf16 %v1167_v41, %v1167_v41  ;;  %v1170_v45 = vadd.f32 %v1729_v37, %v1169_v43  ;;  %v1933_v46 = vpop.f32.mrb[39].mxu0  ;;  %v1739_v43 = vld [vmem:[%s2475_s6] ss:$0 sm:$0xff] }
 0xd4e   :  { %v1174_v47 = vpack.c.bf16 %v1170_v45, %v1170_v45  ;;  %1176 = vrot.lane.b32.xlu0 %v1173_v44, %s2075_s2 }
 0xd50   :  { %1225 = vrot.lane.b32.xlu1 %v1174_v47, %s2075_s2 }
 0xdc0   :  { %v1177_v48 = vpop.permute.xlu0 %1176 }
 0xdc1   :  { %v1182_v49 = vsel %vm167_vm2, %v1177_v48, 0 }
 0xdc2   :  { %1935 = vmatpush3.bf16.xpose.msra.mxu1 %v1182_v49  ;;  %v1226_v50 = vpop.permute.xlu1 %1225 }
 0xdc3   :  { %v1231_v51 = vsel %vm167_vm2, %v1226_v50, 0  ;;  %1946 = vmatprep.subr.bf16.mxu1 %v2073_v15 }
 0xdc4   :  { %1941 = vmatpush3.bf16.xpose.msra.mxu0 %v1231_v51 }
 0xdc5   :  { %1952 = vmatprep.subr.bf16.mxu0 %v2073_v15 }
 0xdc9   :  { %1937 = vmatmul.mubr.msk.bf16.vlgmr.msra.gmra.mrb[36].mxu1 %vm167_vm2, %v1173_v44 }
 0xdca   :  { %1948 = vmatprep.mubr.msk.bf16.mxu1 %vm2074_vm1, %v2073_v15 }
 0xdcb   :  { %1943 = vmatmul.mubr.msk.bf16.vlgmr.msra.gmra.mrb[40].mxu0 %vm167_vm2, %v1174_v47 }
 0xdcc   :  { %1954 = vmatprep.mubr.msk.bf16.mxu0 %vm2074_vm1, %v2073_v15 }
 0xe1b   :  { %v1098_v52 = vpop.f32.mrb[32].mxu1 }
 0xe1c   :  { %v2370_v53 = vadd.f32 %v1098_v52, %v2299_v35  ;;  %v1924_v54 = vpop.f32.mrb[33].mxu1 }
 0xe1d   :  { %v1101_v55 = vpop.f32.mrb[34].mxu1 }
 0xe1e   :  { %v2373_v56 = vadd.f32 %v1101_v55, %v2301_v38  ;;  %v1925_v57 = vpop.f32.mrb[35].mxu1 }
 0xe9c   :  { %v1218_v58 = vpop.f32.mrb[36].mxu1 }
 0xe9d   :  { %v1938_v59 = vpop.f32.mrb[37].mxu1  ;;  %v1273_v60 = vsel %vm167_vm2, %v1218_v58, -inf }
 0xe9e   :  { %1274 = vmax.xlane.f32.xlu0 %v1273_v60  ;;  %v1221_v61 = vpop.f32.mrb[38].mxu1  ;;  %v1267_v62 = vpop.f32.mrb[40].mxu0 }
 0xe9f   :  { %v1939_v63 = vpop.f32.mrb[39].mxu1  ;;  %v1944_v2 = vpop.f32.mrb[41].mxu0  ;;  %v1276_v3 = vsel %vm167_vm2, %v1267_v62, -inf  ;;  %v1999_v61 = vld [vmem:[%s2478_s9] sm:$0xff]  }
 0xea0   :  { %1277 = vmax.xlane.f32.xlu1 %v1276_v3  ;;  %v1270_v35 = vpop.f32.mrb[42].mxu0 }
 0xea1   :  { %v1945_v4 = vpop.f32.mrb[43].mxu0 }
 0xeb1   :  { %1345 = vrot.lane.b32.xlu1 %v1174_v47, %s2076_s20 }
 0xf2b   :  { %v1275_v5 = vpop.xlane.xlu0 %1274 }
 0xf2c   :  { %v1279_v38 = vsub.f32 %v1218_v58, %v1275_v5 }
 0xf2d   :  { %v1278_v6 = vpop.xlane.xlu1 %1277 }
 0xf2e   :  { %v1281_v7 = vmul.f32 1.442695, %v1279_v38  ;;  %v1280_v8 = vsub.f32 %v1267_v62, %v1278_v6  ;;  %v2000_v62 = vld [vmem:[%s2478_s9 + $0x8] sm:$0xff]   ;;  %v1740_v6 = vld [vmem:[%s2476_s7] ss:$0 sm:$0xff] }
 0xf30   :  { %2033 = vpow2.f32 %v1281_v7  ;;  %v1283_v9 = vmul.f32 1.442695, %v1280_v8 }
 0xf31   :  { %v1346_v10 = vpop.permute.xlu1 %1345 }
 0xf32   :  { %2035 = vpow2.f32 %v1283_v9  ;;  %v1351_v11 = vsel %vm292_vm3, %v1346_v10, 0 }
 0xf33   :  { %1953 = vmatpush3.bf16.msra.mxu0 %v1351_v11  ;;  %v1741_v11 = vld [vmem:[%s2477_s8] ss:$0 sm:$0xff] }
 0xf34   :  { %1964 = vmatprep.subr.bf16.mxu0 %v2073_v15 }
 0xf3a   :  { %v2034_v12 = vpop.eup %2033 }
 0xf3b   :  { %v1285_v13 = vsel %vm167_vm2, %v2034_v12, 0.0 }
 0xf3c   :  { %v2036_v14 = vpop.eup %2035  ;;  %1286 = vadd.xlane.f32.xlu0 %v1285_v13 }
 0xf3d   :  { %v1288_v16 = vsel %vm167_vm2, %v2036_v14, 0.0 }
 0xf40   :  { %1289 = vadd.xlane.f32.xlu0 %v1288_v16 }
 0xf56   :  { %1297 = vrot.lane.b32.xlu0 %v1173_v44, %s2076_s20 }
 0xfc9   :  { %v1287_v17 = vpop.xlane.xlu0 %1286 }
 0xfca   :  { %2037 = vrcp.f32 %v1287_v17  ;;  %v2001_v17 = vld [vmem:[%s2480_s11] sm:$0xff]  }
 0xfcd   :  { %v1290_v18 = vpop.xlane.xlu0 %1289 }
 0xfce   :  { %2039 = vrcp.f32 %v1290_v18  ;;  %v2002_v18 = vld [vmem:[%s2480_s11 + $0x8] sm:$0xff]  }
 0xfd1   :  { %v1298_v19 = vpop.permute.xlu0 %1297 }
 0xfd2   :  { %v1303_v20 = vsel %vm292_vm3, %v1298_v19, 0  ;;  %v2003_v19 = vld [vmem:[%s2480_s11 + $0x10] sm:$0xff]  }
 0xfd3   :  { %1947 = vmatpush3.bf16.msra.mxu1 %v1303_v20  ;;  %v2004_v20 = vld [vmem:[%s2480_s11 + $0x18] sm:$0xff]  }
 0xfd4   :  { %v2038_v21 = vpop.eup %2037  ;;  %1958 = vmatprep.subr.bf16.mxu1 %v2073_v15 }
 0xfd5   :  { %v1293_v22 = vmul.f32 %v2038_v21, %v2034_v12  ;;  %v1742_v21 = vld [vmem:[%s2479_s10] ss:$0 sm:$0xff] }
 0xfd7   :  { %v1295_v23 = vpack.c.bf16 %v1293_v22, %v1293_v22 }
 0xfd8   :  { %v2040_v24 = vpop.eup %2039 }
 0xfd9   :  { %v1294_v25 = vmul.f32 %v2040_v24, %v2036_v14  ;;  %1949 = vmatmul.mubr.msk.bf16.vlgmr.msra.gmra.mrb[40].mxu1 %vm167_vm2, %v1295_v23 }
 0xfda   :  { %1960 = vmatprep.mubr.msk.bf16.mxu1 %vm2074_vm1, %v2073_v15  ;;  %1959 = vmatpush3.bf16.msra.mxu1 %v1400_v28 }
 0xfdb   :  { %v1296_v26 = vpack.c.bf16 %v1294_v25, %v1294_v25  ;;  %1972 = vmatprep.subr.bf16.mxu1 %v2073_v15 }
 0xfdd   :  { %1955 = vmatmul.mubr.msk.bf16.vlgmr.msra.gmra.mrb[44].mxu0 %vm167_vm2, %v1296_v26 }
 0xfde   :  { %1968 = vmatprep.mubr.msk.bf16.mxu0 %vm2074_vm1, %v2073_v15  ;;  %1965 = vmatpush3.bf16.msra.mxu0 %v1999_v61 }
 0xfdf   :  { %1966 = vmatprep.subr.bf16.mxu0 %v2073_v15 }
 0xfe2   :  { %1967 = vmatpush3.bf16.msra.mxu0 %v2000_v62 }
0x10ac   :  { %v1339_v29 = vpop.f32.mrb[40].mxu1 }
0x10ad   :  { %v1950_v30 = vpop.f32.mrb[41].mxu1 }
0x10ae   :  { %v1342_v31 = vpop.f32.mrb[42].mxu1 }
0x10af   :  { %v1951_v32 = vpop.f32.mrb[43].mxu1 }
0x10b0   :  { %v1387_v34 = vpop.f32.mrb[44].mxu0 }
0x10b1   :  { %v1393_v36 = vpack.c.bf16 %v1387_v34, %v1339_v29  ;;  %v1956_v33 = vpop.f32.mrb[45].mxu0 }
0x10b2   :  { %v1390_v37 = vpop.f32.mrb[46].mxu0 }
0x10b3   :  { %v1957_v39 = vpop.f32.mrb[47].mxu0  ;;  %1961 = vmatmul.mubr.msk.bf16.vlgmr.msra.gmra.mrb[44].mxu1 %vm167_vm2, %v1393_v36 }
0x10b4   :  { %1980 = vmatprep.mubr.msk.bf16.mxu1 %vm2074_vm1, %v2073_v15  ;;  %1973 = vmatpush3.bf16.msra.mxu1 %v2001_v17 }
0x10b5   :  { %1974 = vmatprep.subr.bf16.mxu1 %v2073_v15 }
0x10b8   :  { %1975 = vmatpush3.bf16.msra.mxu1 %v2002_v18 }
0x10b9   :  { %1976 = vmatprep.subr.bf16.mxu1 %v2073_v15 }
0x10bc   :  { %1977 = vmatpush3.bf16.msra.mxu1 %v2003_v19 }
0x10bd   :  { %1978 = vmatprep.subr.bf16.mxu1 %v2073_v15 }
0x10c0   :  { %1979 = vmatpush3.bf16.msra.mxu1 %v2004_v20 }
0x1186   :  { %v1436_v40 = vpop.f32.mrb[44].mxu1 }
0x1187   :  { %v1443_v41 = vadd.f32 %v1436_v40, %v2370_v53  ;;  %v1962_v42 = vpop.f32.mrb[45].mxu1  ;;  %v1746_v40 = vld [vmem:[%s2481_s12] ss:$0 sm:$0xff] }
0x1188   :  { %v1439_v44 = vpop.f32.mrb[46].mxu1 }
0x1189   :  { %v1445_v45 = vadd.f32 %v1443_v41, %v2153_v0  ;;  %v1444_v46 = vadd.f32 %v1439_v44, %v2373_v56  ;;  %v1963_v47 = vpop.f32.mrb[47].mxu1 }
0x118b   :  { %v2405_v48 = vadd.f32 %v1739_v43, %v1445_v45  ;;  %v1446_v49 = vadd.f32 %v1444_v46, %v2158_v1 }
0x118d   :  { %v2408_v50 = vadd.f32 %v1739_v43, %v1446_v49  ;;  %v1458_v51 = vsel %vm50_vm0, %v2405_v48, 0.0 }
0x118e   :  { %1459 = vadd.xlane.f32.xlu1 %v1458_v51 }
0x118f   :  { %v1461_v52 = vsel %vm50_vm0, %v2408_v50, 0.0 }
0x1190   :  { %1462 = vadd.xlane.f32.xlu0 %v1461_v52 }
0x121b   :  { %v1460_v53 = vpop.xlane.xlu1 %1459 }
0x121c   :  { %v1464_v54 = vmul.f32 0.03125, %v1460_v53 }
0x121d   :  { %v1463_v0 = vpop.xlane.xlu0 %1462 }
0x121e   :  { %v1466_v55 = vsub.f32 %v2405_v48, %v1464_v54  ;;  %v1465_v56 = vmul.f32 0.03125, %v1463_v0 }
0x1220   :  { %v1467_v57 = vsub.f32 %v2408_v50, %v1465_v56  ;;  %v1468_v58 = vmul.f32 %v1466_v55, %v1466_v55 }
0x1222   :  { %v1470_v1 = vsel %vm50_vm0, %v1468_v58, 0.0  ;;  %v1469_v59 = vmul.f32 %v1467_v57, %v1467_v57 }
0x1223   :  { %1471 = vadd.xlane.f32.xlu0 %v1470_v1 }
0x1224   :  { %v1473_v60 = vsel %vm50_vm0, %v1469_v59, 0.0 }
0x1225   :  { %1474 = vadd.xlane.f32.xlu1 %v1473_v60 }
0x12b0   :  { %v1472_v63 = vpop.xlane.xlu0 %1471 }
0x12b1   :  { %v1476_v2 = vmul.f32 0.03125, %v1472_v63 }
0x12b2   :  { %v1475_v3 = vpop.xlane.xlu1 %1474 }
0x12b3   :  { %v1478_v35 = vadd.f32 1e-05, %v1476_v2  ;;  %v1477_v4 = vmul.f32 0.03125, %v1475_v3 }
0x12b5   :  { %2041 = vrsqrt.f32 %v1478_v35  ;;  %v1479_v5 = vadd.f32 1e-05, %v1477_v4 }
0x12b7   :  { %2043 = vrsqrt.f32 %v1479_v5 }
0x12bf   :  { %v2042_v38 = vpop.eup %2041 }
0x12c0   :  { %v1482_v7 = vmul.f32 %v2042_v38, %v1466_v55 }
0x12c1   :  { %v2044_v8 = vpop.eup %2043 }
0x12c2   :  { %v1490_v9 = vmul.f32 %v1740_v6, %v1482_v7  ;;  %v1483_v10 = vmul.f32 %v2044_v8, %v1467_v57 }
0x12c4   :  { %v1491_v12 = vmul.f32 %v1740_v6, %v1483_v10  ;;  %v1498_v13 = vadd.f32 %v1741_v11, %v1490_v9 }
0x12c6   :  { %v1499_v14 = vadd.f32 %v1741_v11, %v1491_v12 }
0x12c8   :  { %v1500_v16 = vpack.c.bf16 %v1499_v14, %v1498_v13 }
0x12ca   :  { %1969 = vmatmul.mubr.msk.bf16.vlgmr.msra.gmra.mrb[48].mxu0 %vm50_vm0, %v1500_v16 }
0x139d   :  { %v1561_v22 = vpop.f32.mrb[48].mxu0 }
0x139e   :  { %v1562_v23 = vadd.f32 %v1742_v21, %v1561_v22  ;;  %v1970_v24 = vpop.f32.mrb[49].mxu0 }
0x139f   :  { %v1564_v25 = vpop.f32.mrb[50].mxu0 }
0x13a0   :  { %v1570_v26 = vmul.f32 0.70710677, %v1562_v23  ;;  %v1565_v27 = vadd.f32 %v1742_v21, %v1564_v25  ;;  %v1971_v28 = vpop.f32.mrb[51].mxu0  ;;  %v1568_v32 = vmul.f32 0.5, %v1562_v23 }
0x13a2   :  { %2045 = verf.f32 %v1570_v26  ;;  %v1571_v29 = vmul.f32 0.70710677, %v1565_v27  ;;  %v1569_v34 = vmul.f32 0.5, %v1565_v27 }
0x13a4   :  { %2047 = verf.f32 %v1571_v29 }
0x13ac   :  { %v2046_v15 = vpop.eup %2045 }
0x13ad   :  { %v1574_v30 = vadd.f32 1.0, %v2046_v15 }
0x13ae   :  { %v2048_v31 = vpop.eup %2047 }
0x13af   :  { %v1575_v36 = vadd.f32 1.0, %v2048_v31  ;;  %v1576_v33 = vmul.f32 %v1574_v30, %v1568_v32 }
0x13b1   :  { %v1577_v37 = vmul.f32 %v1575_v36, %v1569_v34 }
0x13b3   :  { %v1578_v39 = vpack.c.bf16 %v1577_v37, %v1576_v33 }
0x13b5   :  { %1981 = vmatmul.mubr.msk.bf16.vlgmr.msra.gmra.mrb[48].mxu1 %vm1618_vm4, %v1578_v39 }
0x1488   :  { %v1656_v41 = vpop.f32.mrb[48].mxu1 }
0x1489   :  { %v1657_v42 = vadd.f32 %v1746_v40, %v1656_v41  ;;  %v1982_v43 = vpop.f32.mrb[49].mxu1 }
0x148a   :  { %v1659_v44 = vpop.f32.mrb[50].mxu1 }
0x148b   :  { %v1663_v45 = vadd.f32 %v1657_v42, %v2405_v48  ;;  %v1660_v46 = vadd.f32 %v1746_v40, %v1659_v44  ;;  %v1983_v47 = vpop.f32.mrb[51].mxu1 }
0x148d   :  { %1665 = vst.msk [vmem:[#allocation2] sm:$0xff] %vm50_vm0, %v1663_v45  ;;  %v1664_v49 = vadd.f32 %v1660_v46, %v2408_v50 }
0x148f   :  { %1666 = vst.msk [vmem:[#allocation2 + $0x8] sm:$0xff] %vm50_vm0, %v1664_v49 }
0x1490   :  { %2060 = shalt.err (!%p2057_p4)
}
0x1491   :  { %s2061_s25 = scalar_lea.hbm %s2482_s13, 256 }
0x1492   :  { %p2062_p5 = scmp.ne.s32.totalorder %s2482_s13, %s2061_s25  ;;  %p2065_p6 = scmp.lt.u32.totalorder %s2061_s25, %s2482_s13 }
0x1494   :  { %p2067_p7 = pnand %p2065_p6, %p2062_p5 }
0x1496   :  { %2070 = shalt.err (!%p2067_p7)
}
0x1497   :  { %s2078_s6 = smov 128   ;;  %s2079_s26 = smov 8  }
0x1498   :  { %1678 = dma.vmem_to_hbm [thread:$0]  %s1673_s3, 256, %s2482_s13, [#allocation3], %s2078_s6, %s2078_s6, %s2079_s26  }
0x1499   :  { %2071 = dma.done.wait [#allocation3], 256  }
0x149a   :  { %2072 = vsyncadd [#allocation3], 4294967040 }
0x149b   :  { %1682 = vsyncpa [#allocation3], 1 }

</bundles_post_ra>
